<compile_context>
chip_gen: v7x
topology: tpu7x:2x2x1
jax: 0.10.0
libtpu: 0.0.40
codegen_flags: <defaults>
</compile_context>

<pallas_src>
import math
from functools import partial

import jax
import jax.numpy as jnp
from jax import lax
from jax.experimental import pallas as pl
from jax.experimental.pallas import tpu as pltpu

# MXU input precision: bf16 hits MXU peak on v5e/v6e/v7x and halves weight
# DMA / resident-weight VMEM.  Accumulation is f32 (preferred_element_type)
# and all element-wise math stays f32 (v5e has no bf16 VPU/EUP).
_MXU_DTYPE = jnp.bfloat16


# ----------------------------------------------------------------------------
# Kernel 1: fused multihead attention (no Q projection) + residual + LayerNorm,
# flash-style over KV chunks, output written time-major.
# Grid = (batch_blocks ["parallel"], kv_chunks ["arbitrary"]).
# ----------------------------------------------------------------------------
def _attn_residual_ln_kernel(embq_ref, embkv_ref, wkv_ref, bkv_ref, wo_ref,
                             bo_ref, gamma_ref, beta_ref, out_ref,
                             m_sc, l_sc, acc_sc, q_sc, *, num_heads):
    kv_step = pl.program_id(1)
    bt, seq, emb = embq_ref.shape
    heads = num_heads
    hd = emb // heads
    scale = 1.0 / math.sqrt(hd)

    # ---- per-batch-block init (first KV chunk of each batch block) ----
    @pl.when(kv_step == 0)
    def _():
        m_sc[...] = jnp.full_like(m_sc, -jnp.inf)
        l_sc[...] = jnp.zeros_like(l_sc)
        acc_sc[...] = jnp.zeros_like(acc_sc)
        # Cache per-head queries once: Q = raw embedding, contiguous hd slices.
        xq = embq_ref[...].astype(jnp.float32)
        q_sc[...] = jnp.stack(
            [xq[b, :, h * hd:(h + 1) * hd]
             for b in range(bt) for h in range(heads)],
            axis=0).astype(q_sc.dtype)

    # ---- KV chunk projection + online-softmax update ----
    xc = embkv_ref[...].astype(jnp.float32)                         # (bt, Tk, E)
    k_list, v_list = [], []
    for b in range(bt):
        kvb = jnp.dot(xc[b].astype(_MXU_DTYPE), wkv_ref[...],
                      preferred_element_type=jnp.float32) + bkv_ref[...]
        # Reference: kv.reshape(B,S,H,2*hd).chunk(2,-1) -> head h is the
        # INTERLEAVED block [k_h | v_h] = kv[:, 2*h*hd : 2*(h+1)*hd].
        for h in range(heads):
            k_list.append(kvb[:, 2 * h * hd:(2 * h + 1) * hd])
            v_list.append(kvb[:, (2 * h + 1) * hd:(2 * h + 2) * hd])
    k_g = jnp.stack(k_list, axis=0).astype(_MXU_DTYPE)              # (bt*H, Tk, hd)
    v_g = jnp.stack(v_list, axis=0).astype(_MXU_DTYPE)              # (bt*H, Tk, hd)

    logits = jnp.einsum('gsd,gtd->gst', q_sc[...], k_g,
                        preferred_element_type=jnp.float32) * scale  # (bt*H,S,Tk)
    m_prev = m_sc[...]
    m_new = jnp.maximum(m_prev, jnp.max(logits, axis=-1, keepdims=True))
    alpha = jnp.exp(m_prev - m_new)
    p = jnp.exp(logits - m_new)
    l_sc[...] = alpha * l_sc[...] + jnp.sum(p, axis=-1, keepdims=True)
    acc_sc[...] = alpha * acc_sc[...] + jnp.einsum(
        'gst,gtd->gsd', p.astype(_MXU_DTYPE), v_g,
        preferred_element_type=jnp.float32)
    m_sc[...] = m_new

    # ---- finalize: normalize, output-project, residual, LayerNorm, write ----
    @pl.when(kv_step == pl.num_programs(1) - 1)
    def _():
        # Exact normalization (parity with the reference softmax).
        vals = acc_sc[...] / l_sc[...]                              # (bt*H, S, hd)
        xq = embq_ref[...].astype(jnp.float32)
        outs = []
        for b in range(bt):
            # concat(heads) == reference values.permute(0,2,1,3).reshape(B,S,E)
            vcat = jnp.concatenate(
                [vals[b * heads + h] for h in range(heads)], axis=-1)  # (S, E)
            attn_out = jnp.dot(vcat.astype(_MXU_DTYPE), wo_ref[...],
                               preferred_element_type=jnp.float32) + bo_ref[...]
            y = xq[b] + attn_out        # residual (dropout == identity in eval)
            mu = jnp.mean(y, axis=-1, keepdims=True)
            var = jnp.mean((y - mu) ** 2, axis=-1, keepdims=True)
            y = (y - mu) * lax.rsqrt(var + 1e-5)
            outs.append(y * gamma_ref[...] + beta_ref[...])
        # time-major lane-dense slab: columns [b*E:(b+1)*E] belong to batch b
        out_ref[...] = jnp.concatenate(outs, axis=-1).astype(out_ref.dtype)


def attn_residual_layernorm(emb_bse, wkv_t, bkv, wo_t, bo, gamma, beta,
                            num_heads):
    B, S, E = emb_bse.shape
    hd = E // num_heads

    # KV-axis chunk (flash style): bounds the in-VMEM (bt*H, S, Tk) logits tile.
    if S > 256 and S % 256 == 0:
        tk = 256
    elif S > 128 and S % 128 == 0:
        tk = 128
    else:
        tk = S   # TODO(synk): pad+mask ragged S and add q-axis tiling for very long S.
    nkv = S // tk

    # Output goes straight into a time-major (S, B*E) slab (free reshape to
    # (S,B,E) outside) so the LSTM never needs an XLA transpose.  When
    # E % 128 == 0 each grid step handles one batch row (lane-aligned (S,E)
    # block); otherwise all rows go in one step so the block is the full array.
    # TODO(synk): for E % 128 != 0 with large B, pick bt with bt*E % 128 == 0.
    bt = 1 if E % 128 == 0 else B
    nb = B // bt

    kernel = partial(_attn_residual_ln_kernel, num_heads=num_heads)
    out2d = pl.pallas_call(
        kernel,
        out_shape=jax.ShapeDtypeStruct((S, B * E), jnp.float32),
        grid_spec=pltpu.PrefetchScalarGridSpec(
            num_scalar_prefetch=0,
            grid=(nb, nkv),
            in_specs=[
                pl.BlockSpec((bt, S, E), lambda b, k: (b, 0, 0)),    # q + residual
                pl.BlockSpec((bt, tk, E), lambda b, k: (b, k, 0)),   # kv chunk
                pl.BlockSpec((E, 2 * E), lambda b, k: (0, 0)),
                pl.BlockSpec((1, 2 * E), lambda b, k: (0, 0)),
                pl.BlockSpec((E, E), lambda b, k: (0, 0)),
                pl.BlockSpec((1, E), lambda b, k: (0, 0)),
                pl.BlockSpec((1, E), lambda b, k: (0, 0)),
                pl.BlockSpec((1, E), lambda b, k: (0, 0)),
            ],
            out_specs=pl.BlockSpec((S, bt * E), lambda b, k: (0, b)),
            scratch_shapes=[
                pltpu.VMEM((bt * num_heads, S, 1), jnp.float32),    # running max
                pltpu.VMEM((bt * num_heads, S, 1), jnp.float32),    # running sum
                pltpu.VMEM((bt * num_heads, S, hd), jnp.float32),   # acc
                pltpu.VMEM((bt * num_heads, S, hd), _MXU_DTYPE),    # cached q heads
            ],
        ),
        compiler_params=pltpu.CompilerParams(
            dimension_semantics=("parallel", "arbitrary"),
            vmem_limit_bytes=64 * 1024 * 1024),
    )(emb_bse, emb_bse, wkv_t, bkv, wo_t, bo, gamma, beta)
    return out2d.reshape(S, B, E)


# ----------------------------------------------------------------------------
# Kernel 2: fused LSTM layer (input projection + recurrence), gate order i,f,g,o.
# Grid iterates time-chunks ("arbitrary"); h/c persist in VMEM scratch across
# chunks.  Per chunk: one (Tc*B, In)@(In,4H) matmul for the x gates (never
# written to HBM), then a sequential loop of single (B,H)@(H,4H) matmuls.
# TODO(synk): on v7x, add a leading "parallel" grid axis splitting the batch
# across the 2 TensorCores (the recurrence is only serial over time).
# ----------------------------------------------------------------------------
def _lstm_layer_kernel(x_ref, wih_ref, b_ref, whh_ref,
                       out_ref, hf_ref, cf_ref,
                       gx_sc, h_sc, c_sc, *, seq_len, batch, chunk, masked):
    @pl.when(pl.program_id(0) == 0)
    def _():
        h_sc[...] = jnp.zeros_like(h_sc)
        c_sc[...] = jnp.zeros_like(c_sc)

    hid = h_sc.shape[-1]

    # Hoisted, fused input projection for the whole chunk (lane-dense 4H wide).
    gx_sc[...] = jnp.dot(x_ref[...].astype(_MXU_DTYPE), wih_ref[...],
                         preferred_element_type=jnp.float32) + b_ref[...]

    base_t = pl.program_id(0) * chunk

    def step(t, carry):
        h = h_sc[...]
        c = c_sc[...]
        row = pl.multiple_of(t * batch, batch)
        # one concatenated (B, H) @ (H, 4H) recurrence matmul
        gates = gx_sc[pl.ds(row, batch), :] + jnp.dot(
            h.astype(_MXU_DTYPE), whh_ref[...],
            preferred_element_type=jnp.float32)                     # (B, 4H)
        i_g = jax.nn.sigmoid(gates[:, 0 * hid:1 * hid])
        f_g = jax.nn.sigmoid(gates[:, 1 * hid:2 * hid])
        g_g = jnp.tanh(gates[:, 2 * hid:3 * hid])
        o_g = jax.nn.sigmoid(gates[:, 3 * hid:4 * hid])
        c_new = f_g * c + i_g * g_g
        h_new = o_g * jnp.tanh(c_new)
        if masked:
            # tail mask: padded timesteps must not advance the recurrent state
            valid = base_t + t < seq_len
            h_new = jnp.where(valid, h_new, h)
            c_new = jnp.where(valid, c_new, c)
        h_sc[...] = h_new
        c_sc[...] = c_new
        out_ref[t] = h_new.astype(out_ref.dtype)
        return carry

    unroll = chunk if chunk <= 8 else (8 if chunk % 8 == 0 else 1)
    lax.fori_loop(0, chunk, step, 0, unroll=unroll)

    hf_ref[...] = h_sc[...].astype(hf_ref.dtype)
    cf_ref[...] = c_sc[...].astype(cf_ref.dtype)


def lstm_layer(x_sbi, wih_t, bias, whh_t, hid_dim):
    S, B, In = x_sbi.shape
    H = hid_dim

    # VMEM-budget-derived time-chunk (v7x has 64 MiB physical / 32 MiB scoped):
    # per-step residency ~ B*(x:2*4*In + out:2*4*H + gx scratch:4*4H) bytes.
    budget = 24 * 1024 * 1024
    bytes_per_step = B * (8 * In + 8 * H + 16 * H)
    tc = budget // max(bytes_per_step, 1)
    tc = max(min(8, S), min(tc, 256, S))
    if tc < S:
        tc = max(8, (tc // 8) * 8)
    nchunks = -(-S // tc)
    sp = nchunks * tc

    x2d = x_sbi.reshape(S * B, In)
    if sp != S:
        x2d = jnp.pad(x2d, ((0, (sp - S) * B), (0, 0)))

    kernel = partial(_lstm_layer_kernel, seq_len=S, batch=B, chunk=tc,
                     masked=(sp != S))
    out, h_fin, c_fin = pl.pallas_call(
        kernel,
        out_shape=(jax.ShapeDtypeStruct((sp, B, H), jnp.float32),
                   jax.ShapeDtypeStruct((B, H), jnp.float32),
                   jax.ShapeDtypeStruct((B, H), jnp.float32)),
        grid_spec=pltpu.PrefetchScalarGridSpec(
            num_scalar_prefetch=0,
            grid=(nchunks,),
            in_specs=[
                pl.BlockSpec((tc * B, In), lambda t: (t, 0)),
                pl.BlockSpec((In, 4 * H), lambda t: (0, 0)),
                pl.BlockSpec((1, 4 * H), lambda t: (0, 0)),
                pl.BlockSpec((H, 4 * H), lambda t: (0, 0)),
            ],
            out_specs=(
                pl.BlockSpec((tc, B, H), lambda t: (t, 0, 0)),
                pl.BlockSpec((B, H), lambda t: (0, 0)),
                pl.BlockSpec((B, H), lambda t: (0, 0)),
            ),
            scratch_shapes=[
                pltpu.VMEM((tc * B, 4 * H), jnp.float32),   # x-gates for the chunk
                pltpu.VMEM((B, H), jnp.float32),            # h carry
                pltpu.VMEM((B, H), jnp.float32),            # c carry
            ],
        ),
        compiler_params=pltpu.CompilerParams(
            dimension_semantics=("arbitrary",),
            vmem_limit_bytes=64 * 1024 * 1024),
    )(x2d, wih_t, bias, whh_t)

    if sp != S:
        out = out[:S]
    return out, h_fin, c_fin


# ----------------------------------------------------------------------------
# Encoder wrapper: parameter setup + glue in plain JAX, hot paths in Pallas.
# ----------------------------------------------------------------------------
class PallasEncoder:
    def __init__(self, input_dim, emb_dim, hid_dim, n_layers, dropout, key):
        self.input_dim = input_dim
        self.emb_dim = emb_dim
        self.hid_dim = hid_dim
        self.n_layers = n_layers
        self.num_heads = 4
        assert emb_dim % self.num_heads == 0

        keys = jax.random.split(key, 3 + 4 * n_layers)

        # nn.Embedding default init: N(0, 1)
        self.emb_weight = jax.random.normal(keys[0], (input_dim, emb_dim),
                                            jnp.float32)

        # MultiheadAttention: qkv_proj Linear(E, 2E) + o_proj Linear(E, E),
        # xavier_uniform weights, zero bias.
        def xavier(k, fan_out, fan_in):
            bound = math.sqrt(6.0 / (fan_in + fan_out))
            return jax.random.uniform(k, (fan_out, fan_in), jnp.float32,
                                      -bound, bound)

        w_kv = xavier(keys[1], 2 * emb_dim, emb_dim)              # (2E, E)
        self.wkv_t = jnp.transpose(w_kv).astype(_MXU_DTYPE)       # (E, 2E) bf16
        self.bkv = jnp.zeros((1, 2 * emb_dim), jnp.float32)
        w_o = xavier(keys[2], emb_dim, emb_dim)
        self.wo_t = jnp.transpose(w_o).astype(_MXU_DTYPE)         # (E, E) bf16
        self.bo = jnp.zeros((1, emb_dim), jnp.float32)

        # LayerNorm(emb_dim): weight=1, bias=0
        self.gamma = jnp.ones((1, emb_dim), jnp.float32)
        self.beta = jnp.zeros((1, emb_dim), jnp.float32)

        # LSTM: per layer W_ih (4H, In), W_hh (4H, H), b_ih, b_hh,
        # all U(-1/sqrt(H), 1/sqrt(H)); combined bias = b_ih + b_hh.
        stdv = 1.0 / math.sqrt(hid_dim)
        self.lstm_wih_t, self.lstm_whh_t, self.lstm_b = [], [], []
        for layer in range(n_layers):
            in_sz = emb_dim if layer == 0 else hid_dim
            k1, k2, k3, k4 = keys[3 + 4 * layer: 3 + 4 * layer + 4]
            w_ih = jax.random.uniform(k1, (4 * hid_dim, in_sz), jnp.float32,
                                      -stdv, stdv)
            w_hh = jax.random.uniform(k2, (4 * hid_dim, hid_dim), jnp.float32,
                                      -stdv, stdv)
            b_ih = jax.random.uniform(k3, (4 * hid_dim,), jnp.float32, -stdv, stdv)
            b_hh = jax.random.uniform(k4, (4 * hid_dim,), jnp.float32, -stdv, stdv)
            self.lstm_wih_t.append(jnp.transpose(w_ih).astype(_MXU_DTYPE))  # (In,4H)
            self.lstm_whh_t.append(jnp.transpose(w_hh).astype(_MXU_DTYPE))  # (H, 4H)
            self.lstm_b.append((b_ih + b_hh).reshape(1, 4 * hid_dim))

    def __call__(self, src):
        # src: (S, B) int32.  Gather directly in (B, S, E) order (src.T is a
        # tiny int transpose); embedding gather stays in XLA.
        emb_bse = self.emb_weight[jnp.transpose(src)]            # (B, S, E)

        # fused attention + residual + LayerNorm, written back time-major
        x = attn_residual_layernorm(
            emb_bse, self.wkv_t, self.bkv, self.wo_t, self.bo,
            self.gamma, self.beta, self.num_heads)               # (S, B, E)

        # multi-layer LSTM (inter-layer dropout is identity in eval mode)
        hiddens, cells = [], []
        for layer in range(self.n_layers):
            x, h, c = lstm_layer(x, self.lstm_wih_t[layer], self.lstm_b[layer],
                                 self.lstm_whh_t[layer], self.hid_dim)
            hiddens.append(h)
            cells.append(c)

        output = x                                               # (S, B, hid)
        hidden = jnp.stack(hiddens, axis=0)                      # (n_layers, B, hid)
        cell = jnp.stack(cells, axis=0)                          # (n_layers, B, hid)
        return output, hidden, cell


if __name__ == "__main__":
    key = jax.random.PRNGKey(0)
    k_param, k_src = jax.random.split(key)

    S, B = 8, 2
    input_dim, emb_dim, hid_dim, n_layers, dropout = 50, 32, 32, 2, 0.1

    enc = PallasEncoder(input_dim, emb_dim, hid_dim, n_layers, dropout, k_param)
    src = jax.random.randint(k_src, (S, B), 0, input_dim, dtype=jnp.int32)

    output, hidden, cell = enc(src)
    jax.block_until_ready((output, hidden, cell))

    assert output.shape == (S, B, hid_dim)
    assert hidden.shape == (n_layers, B, hid_dim)
    assert cell.shape == (n_layers, B, hid_dim)
    print("KERNEL_OK")
</pallas_src>

<mosaic_0001>
module attributes {stable_mosaic.version = 11 : i64} {
  func.func @_attn_residual_ln_kernel(%arg0: i32, %arg1: i32, %arg2: memref<2x8x32xf32, #tpu.memory_space<vmem>>, %arg3: memref<2x8x32xf32, #tpu.memory_space<vmem>>, %arg4: memref<32x64xbf16, #tpu.memory_space<vmem>>, %arg5: memref<1x64xf32, #tpu.memory_space<vmem>>, %arg6: memref<32x32xbf16, #tpu.memory_space<vmem>>, %arg7: memref<1x32xf32, #tpu.memory_space<vmem>>, %arg8: memref<1x32xf32, #tpu.memory_space<vmem>>, %arg9: memref<1x32xf32, #tpu.memory_space<vmem>>, %arg10: memref<8x64xf32, #tpu.memory_space<vmem>>, %arg11: memref<8x8x1xf32, #tpu.memory_space<vmem>>, %arg12: memref<8x8x1xf32, #tpu.memory_space<vmem>>, %arg13: memref<8x8x8xf32, #tpu.memory_space<vmem>>, %arg14: memref<8x8x8xbf16, #tpu.memory_space<vmem>>) attributes {dimension_semantics = [#tpu.dimension_semantics<parallel>, #tpu.dimension_semantics<arbitrary>], iteration_bounds = array<i64: 1, 1>, scalar_prefetch = 0 : i64, scratch_operands = 4 : i64, tpu.core_type = #tpu.core_type<tc>, window_params = [{transform_indices = @transform_0, window_bounds = array<i64: 2, 8, 32>}, {transform_indices = @transform_1, window_bounds = array<i64: 2, 8, 32>}, {pipeline_mode = #tpu.pipeline_mode<synchronous>, transform_indices = @transform_2, window_bounds = array<i64: 32, 64>}, {pipeline_mode = #tpu.pipeline_mode<synchronous>, transform_indices = @transform_3, window_bounds = array<i64: 1, 64>}, {pipeline_mode = #tpu.pipeline_mode<synchronous>, transform_indices = @transform_4, window_bounds = array<i64: 32, 32>}, {pipeline_mode = #tpu.pipeline_mode<synchronous>, transform_indices = @transform_5, window_bounds = array<i64: 1, 32>}, {pipeline_mode = #tpu.pipeline_mode<synchronous>, transform_indices = @transform_6, window_bounds = array<i64: 1, 32>}, {pipeline_mode = #tpu.pipeline_mode<synchronous>, transform_indices = @transform_7, window_bounds = array<i64: 1, 32>}, {transform_indices = @transform_8, window_bounds = array<i64: 8, 64>}]} {
    %c0_i32 = arith.constant 0 : i32
    %0 = arith.cmpi eq, %arg1, %c0_i32 : i32
    %1 = arith.extui %0 : i1 to i32
    %c0_i32_0 = arith.constant 0 : i32
    %2 = arith.cmpi ne, %1, %c0_i32_0 : i32
    scf.if %2 {
      %cst_40 = arith.constant 0xFF800000 : f32
      %86 = vector.broadcast %cst_40 : f32 to vector<8x8x1xf32>
      %c0_41 = arith.constant 0 : index
      %c0_42 = arith.constant 0 : index
      %c0_43 = arith.constant 0 : index
      %87 = vector.load %arg11[%c0_41, %c0_42, %c0_43] : memref<8x8x1xf32, #tpu.memory_space<vmem>>, vector<8x8x1xf32>
      tpu.vector_store %arg11[%c0_41, %c0_42, %c0_43], %86 {strides = array<i32>} : memref<8x8x1xf32, #tpu.memory_space<vmem>>, vector<8x8x1xf32>,
      %cst_44 = arith.constant 0.000000e+00 : f32
      %88 = vector.broadcast %cst_44 : f32 to vector<8x8x1xf32>
      %c0_45 = arith.constant 0 : index
      %c0_46 = arith.constant 0 : index
      %c0_47 = arith.constant 0 : index
      %89 = vector.load %arg12[%c0_45, %c0_46, %c0_47] : memref<8x8x1xf32, #tpu.memory_space<vmem>>, vector<8x8x1xf32>
      tpu.vector_store %arg12[%c0_45, %c0_46, %c0_47], %88 {strides = array<i32>} : memref<8x8x1xf32, #tpu.memory_space<vmem>>, vector<8x8x1xf32>,
      %cst_48 = arith.constant 0.000000e+00 : f32
      %90 = vector.broadcast %cst_48 : f32 to vector<8x8x8xf32>
      %c0_49 = arith.constant 0 : index
      %c0_50 = arith.constant 0 : index
      %c0_51 = arith.constant 0 : index
      %91 = vector.load %arg13[%c0_49, %c0_50, %c0_51] : memref<8x8x8xf32, #tpu.memory_space<vmem>>, vector<8x8x8xf32>
      tpu.vector_store %arg13[%c0_49, %c0_50, %c0_51], %90 {strides = array<i32>} : memref<8x8x8xf32, #tpu.memory_space<vmem>>, vector<8x8x8xf32>,
      %c0_52 = arith.constant 0 : index
      %c0_53 = arith.constant 0 : index
      %c0_54 = arith.constant 0 : index
      %92 = vector.load %arg2[%c0_52, %c0_53, %c0_54] : memref<2x8x32xf32, #tpu.memory_space<vmem>>, vector<2x8x32xf32>
      %93 = vector.extract_strided_slice %92 {offsets = [0, 0, 0], sizes = [1, 8, 8], strides = [1, 1, 1]} : vector<2x8x32xf32> to vector<1x8x8xf32>
      %94 = vector.shape_cast %93 : vector<1x8x8xf32> to vector<8x8xf32>
      %95 = vector.extract_strided_slice %92 {offsets = [0, 0, 8], sizes = [1, 8, 8], strides = [1, 1, 1]} : vector<2x8x32xf32> to vector<1x8x8xf32>
      %96 = vector.shape_cast %95 : vector<1x8x8xf32> to vector<8x8xf32>
      %97 = vector.extract_strided_slice %92 {offsets = [0, 0, 16], sizes = [1, 8, 8], strides = [1, 1, 1]} : vector<2x8x32xf32> to vector<1x8x8xf32>
      %98 = vector.shape_cast %97 : vector<1x8x8xf32> to vector<8x8xf32>
      %99 = vector.extract_strided_slice %92 {offsets = [0, 0, 24], sizes = [1, 8, 8], strides = [1, 1, 1]} : vector<2x8x32xf32> to vector<1x8x8xf32>
      %100 = vector.shape_cast %99 : vector<1x8x8xf32> to vector<8x8xf32>
      %101 = vector.extract_strided_slice %92 {offsets = [1, 0, 0], sizes = [1, 8, 8], strides = [1, 1, 1]} : vector<2x8x32xf32> to vector<1x8x8xf32>
      %102 = vector.shape_cast %101 : vector<1x8x8xf32> to vector<8x8xf32>
      %103 = vector.extract_strided_slice %92 {offsets = [1, 0, 8], sizes = [1, 8, 8], strides = [1, 1, 1]} : vector<2x8x32xf32> to vector<1x8x8xf32>
      %104 = vector.shape_cast %103 : vector<1x8x8xf32> to vector<8x8xf32>
      %105 = vector.extract_strided_slice %92 {offsets = [1, 0, 16], sizes = [1, 8, 8], strides = [1, 1, 1]} : vector<2x8x32xf32> to vector<1x8x8xf32>
      %106 = vector.shape_cast %105 : vector<1x8x8xf32> to vector<8x8xf32>
      %107 = vector.extract_strided_slice %92 {offsets = [1, 0, 24], sizes = [1, 8, 8], strides = [1, 1, 1]} : vector<2x8x32xf32> to vector<1x8x8xf32>
      %108 = vector.shape_cast %107 : vector<1x8x8xf32> to vector<8x8xf32>
      %109 = vector.shape_cast %94 : vector<8x8xf32> to vector<1x8x8xf32>
      %110 = vector.shape_cast %96 : vector<8x8xf32> to vector<1x8x8xf32>
      %111 = vector.shape_cast %98 : vector<8x8xf32> to vector<1x8x8xf32>
      %112 = vector.shape_cast %100 : vector<8x8xf32> to vector<1x8x8xf32>
      %113 = vector.shape_cast %102 : vector<8x8xf32> to vector<1x8x8xf32>
      %114 = vector.shape_cast %104 : vector<8x8xf32> to vector<1x8x8xf32>
      %115 = vector.shape_cast %106 : vector<8x8xf32> to vector<1x8x8xf32>
      %116 = vector.shape_cast %108 : vector<8x8xf32> to vector<1x8x8xf32>
      %117 = tpu.concatenate %109, %110, %111, %112, %113, %114, %115, %116 in 0 : vector<1x8x8xf32>, vector<1x8x8xf32>, vector<1x8x8xf32>, vector<1x8x8xf32>, vector<1x8x8xf32>, vector<1x8x8xf32>, vector<1x8x8xf32>, vector<1x8x8xf32> -> vector<8x8x8xf32>
      %118 = arith.truncf %117 : vector<8x8x8xf32> to vector<8x8x8xbf16>
      %c0_55 = arith.constant 0 : index
      %c0_56 = arith.constant 0 : index
      %c0_57 = arith.constant 0 : index
      %119 = vector.load %arg14[%c0_55, %c0_56, %c0_57] : memref<8x8x8xbf16, #tpu.memory_space<vmem>>, vector<8x8x8xbf16>
      tpu.vector_store %arg14[%c0_55, %c0_56, %c0_57], %118 {strides = array<i32>} : memref<8x8x8xbf16, #tpu.memory_space<vmem>>, vector<8x8x8xbf16>,
    } else {
    }
    %c0 = arith.constant 0 : index
    %c0_1 = arith.constant 0 : index
    %c0_2 = arith.constant 0 : index
    %3 = vector.load %arg3[%c0, %c0_1, %c0_2] : memref<2x8x32xf32, #tpu.memory_space<vmem>>, vector<2x8x32xf32>
    %4 = vector.extract_strided_slice %3 {offsets = [0, 0, 0], sizes = [1, 8, 32], strides = [1, 1, 1]} : vector<2x8x32xf32> to vector<1x8x32xf32>
    %5 = vector.shape_cast %4 : vector<1x8x32xf32> to vector<8x32xf32>
    %6 = arith.truncf %5 : vector<8x32xf32> to vector<8x32xbf16>
    %c0_3 = arith.constant 0 : index
    %c0_4 = arith.constant 0 : index
    %7 = vector.load %arg4[%c0_3, %c0_4] : memref<32x64xbf16, #tpu.memory_space<vmem>>, vector<32x64xbf16>
    %cst = arith.constant dense<0.000000e+00> : vector<8x64xf32>
    %8 = tpu.matmul %6, %7, %cst {dimension_numbers = #tpu.dot_dimension_numbers<[1], [0], [0], [1], [0, 0, 1, 1], [], []>} : vector<8x32xbf16>, vector<32x64xbf16>, vector<8x64xf32> -> vector<8x64xf32>
    %c0_5 = arith.constant 0 : index
    %c0_6 = arith.constant 0 : index
    %9 = vector.load %arg5[%c0_5, %c0_6] : memref<1x64xf32, #tpu.memory_space<vmem>>, vector<1x64xf32>
    %10 = vector.broadcast %9 : vector<1x64xf32> to vector<8x64xf32>
    %11 = arith.addf %8, %10 : vector<8x64xf32>
    %12 = vector.extract_strided_slice %11 {offsets = [0, 0], sizes = [8, 8], strides = [1, 1]} : vector<8x64xf32> to vector<8x8xf32>
    %13 = vector.extract_strided_slice %11 {offsets = [0, 8], sizes = [8, 8], strides = [1, 1]} : vector<8x64xf32> to vector<8x8xf32>
    %14 = vector.extract_strided_slice %11 {offsets = [0, 16], sizes = [8, 8], strides = [1, 1]} : vector<8x64xf32> to vector<8x8xf32>
    %15 = vector.extract_strided_slice %11 {offsets = [0, 24], sizes = [8, 8], strides = [1, 1]} : vector<8x64xf32> to vector<8x8xf32>
    %16 = vector.extract_strided_slice %11 {offsets = [0, 32], sizes = [8, 8], strides = [1, 1]} : vector<8x64xf32> to vector<8x8xf32>
    %17 = vector.extract_strided_slice %11 {offsets = [0, 40], sizes = [8, 8], strides = [1, 1]} : vector<8x64xf32> to vector<8x8xf32>
    %18 = vector.extract_strided_slice %11 {offsets = [0, 48], sizes = [8, 8], strides = [1, 1]} : vector<8x64xf32> to vector<8x8xf32>
    %19 = vector.extract_strided_slice %11 {offsets = [0, 56], sizes = [8, 8], strides = [1, 1]} : vector<8x64xf32> to vector<8x8xf32>
    %20 = vector.extract_strided_slice %3 {offsets = [1, 0, 0], sizes = [1, 8, 32], strides = [1, 1, 1]} : vector<2x8x32xf32> to vector<1x8x32xf32>
    %21 = vector.shape_cast %20 : vector<1x8x32xf32> to vector<8x32xf32>
    %22 = arith.truncf %21 : vector<8x32xf32> to vector<8x32xbf16>
    %c0_7 = arith.constant 0 : index
    %c0_8 = arith.constant 0 : index
    %23 = vector.load %arg4[%c0_7, %c0_8] : memref<32x64xbf16, #tpu.memory_space<vmem>>, vector<32x64xbf16>
    %cst_9 = arith.constant dense<0.000000e+00> : vector<8x64xf32>
    %24 = tpu.matmul %22, %23, %cst_9 {dimension_numbers = #tpu.dot_dimension_numbers<[1], [0], [0], [1], [0, 0, 1, 1], [], []>} : vector<8x32xbf16>, vector<32x64xbf16>, vector<8x64xf32> -> vector<8x64xf32>
    %c0_10 = arith.constant 0 : index
    %c0_11 = arith.constant 0 : index
    %25 = vector.load %arg5[%c0_10, %c0_11] : memref<1x64xf32, #tpu.memory_space<vmem>>, vector<1x64xf32>
    %26 = vector.broadcast %25 : vector<1x64xf32> to vector<8x64xf32>
    %27 = arith.addf %24, %26 : vector<8x64xf32>
    %28 = vector.extract_strided_slice %27 {offsets = [0, 0], sizes = [8, 8], strides = [1, 1]} : vector<8x64xf32> to vector<8x8xf32>
    %29 = vector.extract_strided_slice %27 {offsets = [0, 8], sizes = [8, 8], strides = [1, 1]} : vector<8x64xf32> to vector<8x8xf32>
    %30 = vector.extract_strided_slice %27 {offsets = [0, 16], sizes = [8, 8], strides = [1, 1]} : vector<8x64xf32> to vector<8x8xf32>
    %31 = vector.extract_strided_slice %27 {offsets = [0, 24], sizes = [8, 8], strides = [1, 1]} : vector<8x64xf32> to vector<8x8xf32>
    %32 = vector.extract_strided_slice %27 {offsets = [0, 32], sizes = [8, 8], strides = [1, 1]} : vector<8x64xf32> to vector<8x8xf32>
    %33 = vector.extract_strided_slice %27 {offsets = [0, 40], sizes = [8, 8], strides = [1, 1]} : vector<8x64xf32> to vector<8x8xf32>
    %34 = vector.extract_strided_slice %27 {offsets = [0, 48], sizes = [8, 8], strides = [1, 1]} : vector<8x64xf32> to vector<8x8xf32>
    %35 = vector.extract_strided_slice %27 {offsets = [0, 56], sizes = [8, 8], strides = [1, 1]} : vector<8x64xf32> to vector<8x8xf32>
    %36 = vector.shape_cast %12 : vector<8x8xf32> to vector<1x8x8xf32>
    %37 = vector.shape_cast %14 : vector<8x8xf32> to vector<1x8x8xf32>
    %38 = vector.shape_cast %16 : vector<8x8xf32> to vector<1x8x8xf32>
    %39 = vector.shape_cast %18 : vector<8x8xf32> to vector<1x8x8xf32>
    %40 = vector.shape_cast %28 : vector<8x8xf32> to vector<1x8x8xf32>
    %41 = vector.shape_cast %30 : vector<8x8xf32> to vector<1x8x8xf32>
    %42 = vector.shape_cast %32 : vector<8x8xf32> to vector<1x8x8xf32>
    %43 = vector.shape_cast %34 : vector<8x8xf32> to vector<1x8x8xf32>
    %44 = tpu.concatenate %36, %37, %38, %39, %40, %41, %42, %43 in 0 : vector<1x8x8xf32>, vector<1x8x8xf32>, vector<1x8x8xf32>, vector<1x8x8xf32>, vector<1x8x8xf32>, vector<1x8x8xf32>, vector<1x8x8xf32>, vector<1x8x8xf32> -> vector<8x8x8xf32>
    %45 = arith.truncf %44 : vector<8x8x8xf32> to vector<8x8x8xbf16>
    %46 = vector.shape_cast %13 : vector<8x8xf32> to vector<1x8x8xf32>
    %47 = vector.shape_cast %15 : vector<8x8xf32> to vector<1x8x8xf32>
    %48 = vector.shape_cast %17 : vector<8x8xf32> to vector<1x8x8xf32>
    %49 = vector.shape_cast %19 : vector<8x8xf32> to vector<1x8x8xf32>
    %50 = vector.shape_cast %29 : vector<8x8xf32> to vector<1x8x8xf32>
    %51 = vector.shape_cast %31 : vector<8x8xf32> to vector<1x8x8xf32>
    %52 = vector.shape_cast %33 : vector<8x8xf32> to vector<1x8x8xf32>
    %53 = vector.shape_cast %35 : vector<8x8xf32> to vector<1x8x8xf32>
    %54 = tpu.concatenate %46, %47, %48, %49, %50, %51, %52, %53 in 0 : vector<1x8x8xf32>, vector<1x8x8xf32>, vector<1x8x8xf32>, vector<1x8x8xf32>, vector<1x8x8xf32>, vector<1x8x8xf32>, vector<1x8x8xf32>, vector<1x8x8xf32> -> vector<8x8x8xf32>
    %55 = arith.truncf %54 : vector<8x8x8xf32> to vector<8x8x8xbf16>
    %c0_12 = arith.constant 0 : index
    %c0_13 = arith.constant 0 : index
    %c0_14 = arith.constant 0 : index
    %56 = vector.load %arg14[%c0_12, %c0_13, %c0_14] : memref<8x8x8xbf16, #tpu.memory_space<vmem>>, vector<8x8x8xbf16>
    "tpu.trace_start"() <{level = 10 : i32, message = "gsd,gtd->gst"}> : () -> ()
    %cst_15 = arith.constant dense<0.000000e+00> : vector<8x8x8xf32>
    %57 = tpu.matmul %56, %45, %cst_15 {dimension_numbers = #tpu.dot_dimension_numbers<[2], [2], [1], [1], [0, 0, 0, 1, 1, 1], [0], [0]>} : vector<8x8x8xbf16>, vector<8x8x8xbf16>, vector<8x8x8xf32> -> vector<8x8x8xf32>
    "tpu.trace_stop"() : () -> ()
    %cst_16 = arith.constant 0.353553385 : f32
    %58 = vector.broadcast %cst_16 : f32 to vector<8x8x8xf32>
    %59 = arith.mulf %57, %58 : vector<8x8x8xf32>
    %c0_17 = arith.constant 0 : index
    %c0_18 = arith.constant 0 : index
    %c0_19 = arith.constant 0 : index
    %60 = vector.load %arg11[%c0_17, %c0_18, %c0_19] : memref<8x8x1xf32, #tpu.memory_space<vmem>>, vector<8x8x1xf32>
    %cst_20 = arith.constant dense<0xFF800000> : vector<8x8xf32>
    %61 = vector.multi_reduction <maximumf>, %59, %cst_20 [2] : vector<8x8x8xf32> to vector<8x8xf32>
    %62 = vector.shape_cast %61 : vector<8x8xf32> to vector<8x8x1xf32>
    %63 = arith.maximumf %60, %62 : vector<8x8x1xf32>
    %64 = arith.subf %60, %63 : vector<8x8x1xf32>
    %65 = math.exp %64 : vector<8x8x1xf32>
    %66 = vector.broadcast %63 : vector<8x8x1xf32> to vector<8x8x8xf32>
    %67 = arith.subf %59, %66 : vector<8x8x8xf32>
    %68 = math.exp %67 : vector<8x8x8xf32>
    %c0_21 = arith.constant 0 : index
    %c0_22 = arith.constant 0 : index
    %c0_23 = arith.constant 0 : index
    %69 = vector.load %arg12[%c0_21, %c0_22, %c0_23] : memref<8x8x1xf32, #tpu.memory_space<vmem>>, vector<8x8x1xf32>
    %70 = arith.mulf %65, %69 : vector<8x8x1xf32>
    %cst_24 = arith.constant dense<0.000000e+00> : vector<8x8xf32>
    %71 = vector.multi_reduction <add>, %68, %cst_24 [2] : vector<8x8x8xf32> to vector<8x8xf32>
    %72 = vector.shape_cast %71 : vector<8x8xf32> to vector<8x8x1xf32>
    %73 = arith.addf %70, %72 : vector<8x8x1xf32>
    %c0_25 = arith.constant 0 : index
    %c0_26 = arith.constant 0 : index
    %c0_27 = arith.constant 0 : index
    %74 = vector.load %arg12[%c0_25, %c0_26, %c0_27] : memref<8x8x1xf32, #tpu.memory_space<vmem>>, vector<8x8x1xf32>
    tpu.vector_store %arg12[%c0_25, %c0_26, %c0_27], %73 {strides = array<i32>} : memref<8x8x1xf32, #tpu.memory_space<vmem>>, vector<8x8x1xf32>,
    %c0_28 = arith.constant 0 : index
    %c0_29 = arith.constant 0 : index
    %c0_30 = arith.constant 0 : index
    %75 = vector.load %arg13[%c0_28, %c0_29, %c0_30] : memref<8x8x8xf32, #tpu.memory_space<vmem>>, vector<8x8x8xf32>
    %76 = vector.broadcast %65 : vector<8x8x1xf32> to vector<8x8x8xf32>
    %77 = arith.mulf %76, %75 : vector<8x8x8xf32>
    %78 = arith.truncf %68 : vector<8x8x8xf32> to vector<8x8x8xbf16>
    "tpu.trace_start"() <{level = 10 : i32, message = "gst,gtd->gsd"}> : () -> ()
    %cst_31 = arith.constant dense<0.000000e+00> : vector<8x8x8xf32>
    %79 = tpu.matmul %78, %55, %cst_31 {dimension_numbers = #tpu.dot_dimension_numbers<[2], [1], [1], [2], [0, 0, 0, 1, 1, 2], [0], [0]>} : vector<8x8x8xbf16>, vector<8x8x8xbf16>, vector<8x8x8xf32> -> vector<8x8x8xf32>
    "tpu.trace_stop"() : () -> ()
    %80 = arith.addf %77, %79 : vector<8x8x8xf32>
    %c0_32 = arith.constant 0 : index
    %c0_33 = arith.constant 0 : index
    %c0_34 = arith.constant 0 : index
    %81 = vector.load %arg13[%c0_32, %c0_33, %c0_34] : memref<8x8x8xf32, #tpu.memory_space<vmem>>, vector<8x8x8xf32>
    tpu.vector_store %arg13[%c0_32, %c0_33, %c0_34], %80 {strides = array<i32>} : memref<8x8x8xf32, #tpu.memory_space<vmem>>, vector<8x8x8xf32>,
    %c0_35 = arith.constant 0 : index
    %c0_36 = arith.constant 0 : index
    %c0_37 = arith.constant 0 : index
    %82 = vector.load %arg11[%c0_35, %c0_36, %c0_37] : memref<8x8x1xf32, #tpu.memory_space<vmem>>, vector<8x8x1xf32>
    tpu.vector_store %arg11[%c0_35, %c0_36, %c0_37], %63 {strides = array<i32>} : memref<8x8x1xf32, #tpu.memory_space<vmem>>, vector<8x8x1xf32>,
    %c0_i32_38 = arith.constant 0 : i32
    %83 = arith.cmpi eq, %arg1, %c0_i32_38 : i32
    %84 = arith.extui %83 : i1 to i32
    %c0_i32_39 = arith.constant 0 : i32
    %85 = arith.cmpi ne, %84, %c0_i32_39 : i32
    scf.if %85 {
      %c0_40 = arith.constant 0 : index
      %c0_41 = arith.constant 0 : index
      %c0_42 = arith.constant 0 : index
      %86 = vector.load %arg13[%c0_40, %c0_41, %c0_42] : memref<8x8x8xf32, #tpu.memory_space<vmem>>, vector<8x8x8xf32>
      %c0_43 = arith.constant 0 : index
      %c0_44 = arith.constant 0 : index
      %c0_45 = arith.constant 0 : index
      %87 = vector.load %arg12[%c0_43, %c0_44, %c0_45] : memref<8x8x1xf32, #tpu.memory_space<vmem>>, vector<8x8x1xf32>
      %88 = vector.broadcast %87 : vector<8x8x1xf32> to vector<8x8x8xf32>
      %89 = arith.divf %86, %88 : vector<8x8x8xf32>
      %c0_46 = arith.constant 0 : index
      %c0_47 = arith.constant 0 : index
      %c0_48 = arith.constant 0 : index
      %90 = vector.load %arg2[%c0_46, %c0_47, %c0_48] : memref<2x8x32xf32, #tpu.memory_space<vmem>>, vector<2x8x32xf32>
      %91 = vector.extract_strided_slice %89 {offsets = [0, 0, 0], sizes = [1, 8, 8], strides = [1, 1, 1]} : vector<8x8x8xf32> to vector<1x8x8xf32>
      %92 = vector.shape_cast %91 : vector<1x8x8xf32> to vector<8x8xf32>
      %93 = vector.extract_strided_slice %89 {offsets = [1, 0, 0], sizes = [1, 8, 8], strides = [1, 1, 1]} : vector<8x8x8xf32> to vector<1x8x8xf32>
      %94 = vector.shape_cast %93 : vector<1x8x8xf32> to vector<8x8xf32>
      %95 = vector.extract_strided_slice %89 {offsets = [2, 0, 0], sizes = [1, 8, 8], strides = [1, 1, 1]} : vector<8x8x8xf32> to vector<1x8x8xf32>
      %96 = vector.shape_cast %95 : vector<1x8x8xf32> to vector<8x8xf32>
      %97 = vector.extract_strided_slice %89 {offsets = [3, 0, 0], sizes = [1, 8, 8], strides = [1, 1, 1]} : vector<8x8x8xf32> to vector<1x8x8xf32>
      %98 = vector.shape_cast %97 : vector<1x8x8xf32> to vector<8x8xf32>
      %99 = tpu.concatenate %92, %94, %96, %98 in 1 : vector<8x8xf32>, vector<8x8xf32>, vector<8x8xf32>, vector<8x8xf32> -> vector<8x32xf32>
      %100 = arith.truncf %99 : vector<8x32xf32> to vector<8x32xbf16>
      %c0_49 = arith.constant 0 : index
      %c0_50 = arith.constant 0 : index
      %101 = vector.load %arg6[%c0_49, %c0_50] : memref<32x32xbf16, #tpu.memory_space<vmem>>, vector<32x32xbf16>
      %cst_51 = arith.constant dense<0.000000e+00> : vector<8x32xf32>
      %102 = tpu.matmul %100, %101, %cst_51 {dimension_numbers = #tpu.dot_dimension_numbers<[1], [0], [0], [1], [0, 0, 1, 1], [], []>} : vector<8x32xbf16>, vector<32x32xbf16>, vector<8x32xf32> -> vector<8x32xf32>
      %c0_52 = arith.constant 0 : index
      %c0_53 = arith.constant 0 : index
      %103 = vector.load %arg7[%c0_52, %c0_53] : memref<1x32xf32, #tpu.memory_space<vmem>>, vector<1x32xf32>
      %104 = vector.broadcast %103 : vector<1x32xf32> to vector<8x32xf32>
      %105 = arith.addf %102, %104 : vector<8x32xf32>
      %106 = vector.extract_strided_slice %90 {offsets = [0, 0, 0], sizes = [1, 8, 32], strides = [1, 1, 1]} : vector<2x8x32xf32> to vector<1x8x32xf32>
      %107 = vector.shape_cast %106 : vector<1x8x32xf32> to vector<8x32xf32>
      %108 = arith.addf %107, %105 : vector<8x32xf32>
      %cst_54 = arith.constant dense<0.000000e+00> : vector<8xf32>
      %109 = vector.multi_reduction <add>, %108, %cst_54 [1] : vector<8x32xf32> to vector<8xf32>
      %110 = vector.shape_cast %109 : vector<8xf32> to vector<8x1xf32>
      %cst_55 = arith.constant 3.200000e+01 : f32
      %111 = vector.broadcast %cst_55 : f32 to vector<8x1xf32>
      %112 = arith.divf %110, %111 : vector<8x1xf32>
      %113 = vector.broadcast %112 : vector<8x1xf32> to vector<8x32xf32>
      %114 = arith.subf %108, %113 : vector<8x32xf32>
      %115 = arith.mulf %114, %114 : vector<8x32xf32>
      %cst_56 = arith.constant dense<0.000000e+00> : vector<8xf32>
      %116 = vector.multi_reduction <add>, %115, %cst_56 [1] : vector<8x32xf32> to vector<8xf32>
      %117 = vector.shape_cast %116 : vector<8xf32> to vector<8x1xf32>
      %cst_57 = arith.constant 3.200000e+01 : f32
      %118 = vector.broadcast %cst_57 : f32 to vector<8x1xf32>
      %119 = arith.divf %117, %118 : vector<8x1xf32>
      %120 = vector.broadcast %112 : vector<8x1xf32> to vector<8x32xf32>
      %121 = arith.subf %108, %120 : vector<8x32xf32>
      %cst_58 = arith.constant 9.99999974E-6 : f32
      %122 = vector.broadcast %cst_58 : f32 to vector<8x1xf32>
      %123 = arith.addf %119, %122 : vector<8x1xf32>
      %124 = math.rsqrt %123 : vector<8x1xf32>
      %125 = vector.broadcast %124 : vector<8x1xf32> to vector<8x32xf32>
      %126 = arith.mulf %121, %125 : vector<8x32xf32>
      %c0_59 = arith.constant 0 : index
      %c0_60 = arith.constant 0 : index
      %127 = vector.load %arg8[%c0_59, %c0_60] : memref<1x32xf32, #tpu.memory_space<vmem>>, vector<1x32xf32>
      %128 = vector.broadcast %127 : vector<1x32xf32> to vector<8x32xf32>
      %129 = arith.mulf %126, %128 : vector<8x32xf32>
      %c0_61 = arith.constant 0 : index
      %c0_62 = arith.constant 0 : index
      %130 = vector.load %arg9[%c0_61, %c0_62] : memref<1x32xf32, #tpu.memory_space<vmem>>, vector<1x32xf32>
      %131 = vector.broadcast %130 : vector<1x32xf32> to vector<8x32xf32>
      %132 = arith.addf %129, %131 : vector<8x32xf32>
      %133 = vector.extract_strided_slice %89 {offsets = [4, 0, 0], sizes = [1, 8, 8], strides = [1, 1, 1]} : vector<8x8x8xf32> to vector<1x8x8xf32>
      %134 = vector.shape_cast %133 : vector<1x8x8xf32> to vector<8x8xf32>
      %135 = vector.extract_strided_slice %89 {offsets = [5, 0, 0], sizes = [1, 8, 8], strides = [1, 1, 1]} : vector<8x8x8xf32> to vector<1x8x8xf32>
      %136 = vector.shape_cast %135 : vector<1x8x8xf32> to vector<8x8xf32>
      %137 = vector.extract_strided_slice %89 {offsets = [6, 0, 0], sizes = [1, 8, 8], strides = [1, 1, 1]} : vector<8x8x8xf32> to vector<1x8x8xf32>
      %138 = vector.shape_cast %137 : vector<1x8x8xf32> to vector<8x8xf32>
      %139 = vector.extract_strided_slice %89 {offsets = [7, 0, 0], sizes = [1, 8, 8], strides = [1, 1, 1]} : vector<8x8x8xf32> to vector<1x8x8xf32>
      %140 = vector.shape_cast %139 : vector<1x8x8xf32> to vector<8x8xf32>
      %141 = tpu.concatenate %134, %136, %138, %140 in 1 : vector<8x8xf32>, vector<8x8xf32>, vector<8x8xf32>, vector<8x8xf32> -> vector<8x32xf32>
      %142 = arith.truncf %141 : vector<8x32xf32> to vector<8x32xbf16>
      %c0_63 = arith.constant 0 : index
      %c0_64 = arith.constant 0 : index
      %143 = vector.load %arg6[%c0_63, %c0_64] : memref<32x32xbf16, #tpu.memory_space<vmem>>, vector<32x32xbf16>
      %cst_65 = arith.constant dense<0.000000e+00> : vector<8x32xf32>
      %144 = tpu.matmul %142, %143, %cst_65 {dimension_numbers = #tpu.dot_dimension_numbers<[1], [0], [0], [1], [0, 0, 1, 1], [], []>} : vector<8x32xbf16>, vector<32x32xbf16>, vector<8x32xf32> -> vector<8x32xf32>
      %c0_66 = arith.constant 0 : index
      %c0_67 = arith.constant 0 : index
      %145 = vector.load %arg7[%c0_66, %c0_67] : memref<1x32xf32, #tpu.memory_space<vmem>>, vector<1x32xf32>
      %146 = vector.broadcast %145 : vector<1x32xf32> to vector<8x32xf32>
      %147 = arith.addf %144, %146 : vector<8x32xf32>
      %148 = vector.extract_strided_slice %90 {offsets = [1, 0, 0], sizes = [1, 8, 32], strides = [1, 1, 1]} : vector<2x8x32xf32> to vector<1x8x32xf32>
      %149 = vector.shape_cast %148 : vector<1x8x32xf32> to vector<8x32xf32>
      %150 = arith.addf %149, %147 : vector<8x32xf32>
      %cst_68 = arith.constant dense<0.000000e+00> : vector<8xf32>
      %151 = vector.multi_reduction <add>, %150, %cst_68 [1] : vector<8x32xf32> to vector<8xf32>
      %152 = vector.shape_cast %151 : vector<8xf32> to vector<8x1xf32>
      %cst_69 = arith.constant 3.200000e+01 : f32
      %153 = vector.broadcast %cst_69 : f32 to vector<8x1xf32>
      %154 = arith.divf %152, %153 : vector<8x1xf32>
      %155 = vector.broadcast %154 : vector<8x1xf32> to vector<8x32xf32>
      %156 = arith.subf %150, %155 : vector<8x32xf32>
      %157 = arith.mulf %156, %156 : vector<8x32xf32>
      %cst_70 = arith.constant dense<0.000000e+00> : vector<8xf32>
      %158 = vector.multi_reduction <add>, %157, %cst_70 [1] : vector<8x32xf32> to vector<8xf32>
      %159 = vector.shape_cast %158 : vector<8xf32> to vector<8x1xf32>
      %cst_71 = arith.constant 3.200000e+01 : f32
      %160 = vector.broadcast %cst_71 : f32 to vector<8x1xf32>
      %161 = arith.divf %159, %160 : vector<8x1xf32>
      %162 = vector.broadcast %154 : vector<8x1xf32> to vector<8x32xf32>
      %163 = arith.subf %150, %162 : vector<8x32xf32>
      %cst_72 = arith.constant 9.99999974E-6 : f32
      %164 = vector.broadcast %cst_72 : f32 to vector<8x1xf32>
      %165 = arith.addf %161, %164 : vector<8x1xf32>
      %166 = math.rsqrt %165 : vector<8x1xf32>
      %167 = vector.broadcast %166 : vector<8x1xf32> to vector<8x32xf32>
      %168 = arith.mulf %163, %167 : vector<8x32xf32>
      %c0_73 = arith.constant 0 : index
      %c0_74 = arith.constant 0 : index
      %169 = vector.load %arg8[%c0_73, %c0_74] : memref<1x32xf32, #tpu.memory_space<vmem>>, vector<1x32xf32>
      %170 = vector.broadcast %169 : vector<1x32xf32> to vector<8x32xf32>
      %171 = arith.mulf %168, %170 : vector<8x32xf32>
      %c0_75 = arith.constant 0 : index
      %c0_76 = arith.constant 0 : index
      %172 = vector.load %arg9[%c0_75, %c0_76] : memref<1x32xf32, #tpu.memory_space<vmem>>, vector<1x32xf32>
      %173 = vector.broadcast %172 : vector<1x32xf32> to vector<8x32xf32>
      %174 = arith.addf %171, %173 : vector<8x32xf32>
      %175 = tpu.concatenate %132, %174 in 1 : vector<8x32xf32>, vector<8x32xf32> -> vector<8x64xf32>
      %c0_77 = arith.constant 0 : index
      %c0_78 = arith.constant 0 : index
      %176 = vector.load %arg10[%c0_77, %c0_78] : memref<8x64xf32, #tpu.memory_space<vmem>>, vector<8x64xf32>
      tpu.vector_store %arg10[%c0_77, %c0_78], %175 {strides = array<i32>} : memref<8x64xf32, #tpu.memory_space<vmem>>, vector<8x64xf32>,
    } else {
    }
    return
  }
  func.func @transform_0(%arg0: i32, %arg1: i32) -> (i32, i32, i32) {
    %c0_i32 = arith.constant 0 : i32
    %c0_i32_0 = arith.constant 0 : i32
    %c0_i32_1 = arith.constant 0 : i32
    return %arg0, %c0_i32, %c0_i32_0 : i32, i32, i32
  }
  func.func @transform_1(%arg0: i32, %arg1: i32) -> (i32, i32, i32) {
    %c0_i32 = arith.constant 0 : i32
    %c0_i32_0 = arith.constant 0 : i32
    return %arg0, %arg1, %c0_i32 : i32, i32, i32
  }
  func.func @transform_2(%arg0: i32, %arg1: i32) -> (i32, i32) {
    %c0_i32 = arith.constant 0 : i32
    %c0_i32_0 = arith.constant 0 : i32
    %c0_i32_1 = arith.constant 0 : i32
    return %c0_i32, %c0_i32_0 : i32, i32
  }
  func.func @transform_3(%arg0: i32, %arg1: i32) -> (i32, i32) {
    %c0_i32 = arith.constant 0 : i32
    %c0_i32_0 = arith.constant 0 : i32
    %c0_i32_1 = arith.constant 0 : i32
    return %c0_i32, %c0_i32_0 : i32, i32
  }
  func.func @transform_4(%arg0: i32, %arg1: i32) -> (i32, i32) {
    %c0_i32 = arith.constant 0 : i32
    %c0_i32_0 = arith.constant 0 : i32
    %c0_i32_1 = arith.constant 0 : i32
    return %c0_i32, %c0_i32_0 : i32, i32
  }
  func.func @transform_5(%arg0: i32, %arg1: i32) -> (i32, i32) {
    %c0_i32 = arith.constant 0 : i32
    %c0_i32_0 = arith.constant 0 : i32
    %c0_i32_1 = arith.constant 0 : i32
    return %c0_i32, %c0_i32_0 : i32, i32
  }
  func.func @transform_6(%arg0: i32, %arg1: i32) -> (i32, i32) {
    %c0_i32 = arith.constant 0 : i32
    %c0_i32_0 = arith.constant 0 : i32
    %c0_i32_1 = arith.constant 0 : i32
    return %c0_i32, %c0_i32_0 : i32, i32
  }
  func.func @transform_7(%arg0: i32, %arg1: i32) -> (i32, i32) {
    %c0_i32 = arith.constant 0 : i32
    %c0_i32_0 = arith.constant 0 : i32
    %c0_i32_1 = arith.constant 0 : i32
    return %c0_i32, %c0_i32_0 : i32, i32
  }
  func.func @transform_8(%arg0: i32, %arg1: i32) -> (i32, i32) {
    %c0_i32 = arith.constant 0 : i32
    %c0_i32_0 = arith.constant 0 : i32
    return %c0_i32, %arg0 : i32, i32
  }
}

</mosaic_0001>

<bundles_post_ra>
// kernel: tpu_custom_call.1
= control target key start
LH: loop header
LB: loop body
LE: loop exit
PB: predicated region body
PF: predicated region fallthrough
CT: control target
= control target key end

     0   :  { %13 = vsyncpa [#allocation7], 0  ;;  %s2786_s0 = inlined_call_operand.hbm [shape: f32[2,8,32], index: 0, kind: input, shape index: {}]   ;;  %s2787_s1 = inlined_call_operand.hbm [shape: f32[2,8,32], index: 1, kind: input, shape index: {}]   ;;  %s2788_s2 = inlined_call_operand.hbm [shape: bf16[32,64], index: 2, kind: input, shape index: {}]   ;;  %s2789_s3 = inlined_call_operand.hbm [shape: f32[1,64], index: 3, kind: input, shape index: {}]   ;;  %s2790_s4 = inlined_call_operand.hbm [shape: bf16[32,32], index: 4, kind: input, shape index: {}]   ;;  %s2791_s5 = inlined_call_operand.hbm [shape: f32[1,32], index: 5, kind: input, shape index: {}]   ;;  %s2792_s6 = inlined_call_operand.hbm [shape: f32[1,32], index: 6, kind: input, shape index: {}]   ;;  %s2793_s7 = inlined_call_operand.hbm [shape: f32[1,32], index: 7, kind: input, shape index: {}]   ;;  %s2794_s8 = inlined_call_operand.hbm [shape: f32[8,64], index: 8, kind: output, shape index: {}]  }
   0x1   :  { %14 = vsyncpa [#allocation10], 0 }
   0x2   :  { %15 = vsyncpa [#allocation13], 0 }
   0x3   :  { %16 = vsyncpa [#allocation16], 0 }
   0x4   :  { %17 = vsyncpa [#allocation19], 0 }
   0x5   :  { %18 = vsyncpa [#allocation8], 0  ;;  %s2180_s27 = smov [#allocation9]   ;;  %s2181_s29 = smov [#allocation12]  }
   0x6   :  { %s36_s28 = sshll.u32 %s2180_s27, 4  ;;  %s61_s30 = sshll.u32 %s2181_s29, 4  ;;  %s37_s28 = int_to_ptr.vmem [resolvable:$true] %s36_s28  ;;  %s2250_s30 = int_to_ptr.vmem [resolvable:$true] %s61_s30 }
   0x7   :  { %s1970_s11 = scalar_lea.hbm %s2787_s1, 256 }
   0x8   :  { %p1971_p0 = scmp.ne.s32.totalorder %s2787_s1, %s1970_s11  ;;  %p1974_p1 = scmp.lt.u32.totalorder %s1970_s11, %s2787_s1 }
   0xa   :  { %p1976_p2 = pnand %p1974_p1, %p1971_p0 }
   0xc   :  { %1979 = shalt.err (!%p1976_p2)
}
   0xd   :  { %s1980_s16 = scalar_lea.vmem %s37_s28, 256  ;;  %p1985_p4 = scmp.lt.s32.totalorder %s37_s28, %s37_s28 }
   0xe   :  { %p1981_p3 = scmp.ne.s32.totalorder %s37_s28, %s1980_s16  ;;  %p1986_p5 = scmp.lt.s32.totalorder %s1980_s16, %s1980_s16 }
  0x10   :  { %p1987_p6 = por %p1986_p5, %p1985_p4 }
  0x12   :  { %p1988_p7 = pnand %p1987_p6, %p1981_p3 }
  0x14   :  { %1991 = shalt.err (!%p1988_p7)
}
  0x15   :  { %s2182_s17 = smov 128   ;;  %s2183_s18 = smov 8  }
  0x16   :  { %42 = dma.hbm_to_vmem [thread:$0]  %s2787_s1, 256, %s37_s28, [#allocation10], %s2182_s17, %s2182_s17, %s2183_s18  }
  0x17   :  { %s1992_s23 = scalar_lea.hbm %s2789_s3, 16 }
  0x18   :  { %p1993_p8 = scmp.ne.s32.totalorder %s2789_s3, %s1992_s23  ;;  %p1996_p9 = scmp.lt.u32.totalorder %s1992_s23, %s2789_s3 }
  0x1a   :  { %p1998_p10 = pnand %p1996_p9, %p1993_p8 }
  0x1c   :  { %2001 = shalt.err (!%p1998_p10)
}
  0x1d   :  { %s2002_s29 = scalar_lea.vmem %s2250_s30, 16  ;;  %s2006_s1 = scalar_lea.vmem %s2250_s30, 32 }
  0x1e   :  { %p2003_p11 = scmp.ne.s32.totalorder %s2250_s30, %s2002_s29  ;;  %p2007_p12 = scmp.lt.s32.totalorder %s2250_s30, %s2250_s30 }
  0x1f   :  { %p2008_p13 = scmp.lt.s32.totalorder %s2006_s1, %s2002_s29 }
  0x21   :  { %p2009_p0 = por %p2008_p13, %p2007_p12 }
  0x23   :  { %p2010_p1 = pnand %p2009_p0, %p2003_p11 }
  0x25   :  { %2013 = shalt.err (!%p2010_p1)
}
  0x26   :  { %64 = dma.hbm_to_vmem [thread:$0]  %s2789_s3, 16, %s2250_s30, [#allocation13]  }
  0x27   :  { %s2184_s10 = smov [#allocation15]   ;;  %s2185_s12 = smov [#allocation6]  }
  0x28   :  { %s83_s11 = sshll.u32 %s2184_s10, 4  ;;  %s24_s13 = sshll.u32 %s2185_s12, 4  ;;  %s84_s11 = int_to_ptr.vmem [resolvable:$true] %s83_s11  ;;  %s2285_s13 = int_to_ptr.vmem [resolvable:$true] %s24_s13 }
  0x29   :  { %s2014_s16 = scalar_lea.hbm %s2791_s5, 16 }
  0x2a   :  { %p2015_p2 = scmp.ne.s32.totalorder %s2791_s5, %s2014_s16  ;;  %p2018_p3 = scmp.lt.u32.totalorder %s2014_s16, %s2791_s5 }
  0x2c   :  { %p2020_p4 = pnand %p2018_p3, %p2015_p2 }
  0x2e   :  { %2023 = shalt.err (!%p2020_p4)
}
  0x2f   :  { %s2024_s3 = scalar_lea.vmem %s84_s11, 16  ;;  %s2028_s30 = scalar_lea.vmem %s84_s11, 32 }
  0x30   :  { %p2025_p5 = scmp.ne.s32.totalorder %s84_s11, %s2024_s3  ;;  %p2029_p6 = scmp.lt.s32.totalorder %s84_s11, %s84_s11 }
  0x31   :  { %p2030_p7 = scmp.lt.s32.totalorder %s2028_s30, %s2024_s3 }
  0x33   :  { %p2031_p8 = por %p2030_p7, %p2029_p6 }
  0x35   :  { %p2032_p9 = pnand %p2031_p8, %p2025_p5 }
  0x37   :  { %2035 = shalt.err (!%p2032_p9)
}
  0x38   :  { %86 = dma.hbm_to_vmem [thread:$0]  %s2791_s5, 16, %s84_s11, [#allocation16]  }
  0x39   :  { %s2036_s27 = scalar_lea.hbm %s2786_s0, 256 }
  0x3a   :  { %p2037_p10 = scmp.ne.s32.totalorder %s2786_s0, %s2036_s27  ;;  %p2040_p11 = scmp.lt.u32.totalorder %s2036_s27, %s2786_s0 }
  0x3c   :  { %p2042_p12 = pnand %p2040_p11, %p2037_p10 }
  0x3e   :  { %2045 = shalt.err (!%p2042_p12)
}
  0x3f   :  { %s2046_s10 = scalar_lea.vmem %s2285_s13, 256  ;;  %p2051_p0 = scmp.lt.s32.totalorder %s2285_s13, %s2285_s13 }
  0x40   :  { %p2047_p13 = scmp.ne.s32.totalorder %s2285_s13, %s2046_s10  ;;  %p2052_p1 = scmp.lt.s32.totalorder %s2046_s10, %s2046_s10 }
  0x42   :  { %p2053_p2 = por %p2052_p1, %p2051_p0 }
  0x44   :  { %p2054_p3 = pnand %p2053_p2, %p2047_p13 }
  0x46   :  { %2057 = shalt.err (!%p2054_p3)
}
  0x47   :  { %30 = dma.hbm_to_vmem [thread:$0]  %s2786_s0, 256, %s2285_s13, [#allocation7], %s2182_s17, %s2182_s17, %s2183_s18  }
  0x48   :  { %s2186_s12 = smov [#allocation11]   ;;  %s2058_s19 = scalar_lea.hbm %s2788_s2, 256 }
  0x49   :  { %s48_s14 = sshll.u32 %s2186_s12, 4  ;;  %p2059_p4 = scmp.ne.s32.totalorder %s2788_s2, %s2058_s19  ;;  %s49_s14 = int_to_ptr.vmem [resolvable:$true] %s48_s14 }
  0x4a   :  { %p2062_p5 = scmp.lt.u32.totalorder %s2058_s19, %s2788_s2 }
  0x4c   :  { %p2064_p6 = pnand %p2062_p5, %p2059_p4 }
  0x4e   :  { %2067 = shalt.err (!%p2064_p6)
}
  0x4f   :  { %s2068_s30 = scalar_lea.vmem %s49_s14, 256  ;;  %p2073_p8 = scmp.lt.s32.totalorder %s49_s14, %s49_s14 }
  0x50   :  { %p2069_p7 = scmp.ne.s32.totalorder %s49_s14, %s2068_s30  ;;  %p2074_p9 = scmp.lt.s32.totalorder %s2068_s30, %s2068_s30 }
  0x52   :  { %p2075_p10 = por %p2074_p9, %p2073_p8 }
  0x54   :  { %p2076_p11 = pnand %p2075_p10, %p2069_p7 }
  0x56   :  { %2079 = shalt.err (!%p2076_p11)
}
  0x57   :  { %s2187_s0 = smov 64   ;;  %s2188_s17 = smov 4  }
  0x58   :  { %54 = dma.hbm_to_vmem [thread:$0]  %s2788_s2, 256, %s49_s14, [#allocation10], %s2187_s0, %s2187_s0, %s2188_s17  }
  0x59   :  { %s2189_s24 = smov [#allocation14]   ;;  %s2190_s26 = smov [#allocation17]  }
  0x5a   :  { %s70_s25 = sshll.u32 %s2189_s24, 4  ;;  %s93_s27 = sshll.u32 %s2190_s26, 4  ;;  %s71_s25 = int_to_ptr.vmem [resolvable:$true] %s70_s25  ;;  %s94_s27 = int_to_ptr.vmem [resolvable:$true] %s93_s27 }
  0x5b   :  { %s2080_s28 = scalar_lea.hbm %s2790_s4, 256 }
  0x5c   :  { %p2081_p12 = scmp.ne.s32.totalorder %s2790_s4, %s2080_s28  ;;  %p2084_p13 = scmp.lt.u32.totalorder %s2080_s28, %s2790_s4 }
  0x5e   :  { %p2086_p0 = pnand %p2084_p13, %p2081_p12 }
  0x60   :  { %2089 = shalt.err (!%p2086_p0)
}
  0x61   :  { %s2090_s2 = scalar_lea.vmem %s71_s25, 256  ;;  %p2095_p2 = scmp.lt.s32.totalorder %s71_s25, %s71_s25 }
  0x62   :  { %p2091_p1 = scmp.ne.s32.totalorder %s71_s25, %s2090_s2  ;;  %p2096_p3 = scmp.lt.s32.totalorder %s2090_s2, %s2090_s2 }
  0x64   :  { %p2097_p4 = por %p2096_p3, %p2095_p2 }
  0x66   :  { %p2098_p5 = pnand %p2097_p4, %p2091_p1 }
  0x68   :  { %2101 = shalt.err (!%p2098_p5)
}
  0x69   :  { %76 = dma.hbm_to_vmem [thread:$0]  %s2790_s4, 256, %s71_s25, [#allocation13], %s2187_s0, %s2187_s0, %s2188_s17  }
  0x6a   :  { %s2102_s19 = scalar_lea.hbm %s2792_s6, 16 }
  0x6b   :  { %p2103_p6 = scmp.ne.s32.totalorder %s2792_s6, %s2102_s19  ;;  %p2106_p7 = scmp.lt.u32.totalorder %s2102_s19, %s2792_s6 }
  0x6d   :  { %p2108_p8 = pnand %p2106_p7, %p2103_p6 }
  0x6f   :  { %2111 = shalt.err (!%p2108_p8)
}
  0x70   :  { %s2112_s30 = scalar_lea.vmem %s94_s27, 16  ;;  %s2116_s13 = scalar_lea.vmem %s94_s27, 32 }
  0x71   :  { %p2113_p9 = scmp.ne.s32.totalorder %s94_s27, %s2112_s30  ;;  %p2117_p10 = scmp.lt.s32.totalorder %s94_s27, %s94_s27 }
  0x72   :  { %p2118_p11 = scmp.lt.s32.totalorder %s2116_s13, %s2112_s30 }
  0x74   :  { %p2119_p12 = por %p2118_p11, %p2117_p10 }
  0x76   :  { %p2120_p13 = pnand %p2119_p12, %p2113_p9 }
  0x78   :  { %2123 = shalt.err (!%p2120_p13)
}
  0x79   :  { %96 = dma.hbm_to_vmem [thread:$0]  %s2792_s6, 16, %s94_s27, [#allocation16]  }
  0x7a   :  { %s2191_s17 = smov [#allocation18]   ;;  %s2124_s26 = scalar_lea.hbm %s2793_s7, 16 }
  0x7b   :  { %s103_s23 = sshll.u32 %s2191_s17, 4  ;;  %p2125_p0 = scmp.ne.s32.totalorder %s2793_s7, %s2124_s26  ;;  %s104_s23 = int_to_ptr.vmem [resolvable:$true] %s103_s23 }
  0x7c   :  { %p2128_p1 = scmp.lt.u32.totalorder %s2124_s26, %s2793_s7 }
  0x7e   :  { %p2130_p2 = pnand %p2128_p1, %p2125_p0 }
  0x80   :  { %2133 = shalt.err (!%p2130_p2)
}
  0x81   :  { %s2134_s10 = scalar_lea.vmem %s104_s23, 16  ;;  %s2138_s6 = scalar_lea.vmem %s104_s23, 32 }
  0x82   :  { %p2135_p3 = scmp.ne.s32.totalorder %s104_s23, %s2134_s10  ;;  %p2139_p4 = scmp.lt.s32.totalorder %s104_s23, %s104_s23 }
  0x83   :  { %p2140_p5 = scmp.lt.s32.totalorder %s2138_s6, %s2134_s10 }
  0x85   :  { %p2141_p6 = por %p2140_p5, %p2139_p4 }
  0x87   :  { %p2142_p7 = pnand %p2141_p6, %p2135_p3 }
  0x89   :  { %2145 = shalt.err (!%p2142_p7)
}
  0x8a   :  { %106 = dma.hbm_to_vmem [thread:$0]  %s2793_s7, 16, %s104_s23, [#allocation19]  }
  0x8b   :  { %2168 = dma.done.wait [#allocation7], 256  }
  0x8c   :  { %2169 = vsyncadd [#allocation7], 4294967040 }
  0x8d   :  { %2170 = dma.done.wait [#allocation10], 512  }
  0x8e   :  { %2171 = vsyncadd [#allocation10], 4294966784 }
  0x8f   :  { %2172 = dma.done.wait [#allocation13], 272  }
  0x90   :  { %2173 = vsyncadd [#allocation13], 4294967024 }
  0x91   :  { %2174 = dma.done.wait [#allocation16], 32  }
  0x92   :  { %2175 = vsyncadd [#allocation16], 4294967264 }
  0x93   :  { %2176 = dma.done.wait [#allocation19], 16  }
  0x94   :  { %2177 = vsyncadd [#allocation19], 4294967280  ;;  %v2192_v0 = vmov 0.0   ;;  %vm2193_vm0 = vmmov 0   ;;  %v1914_v1 = vld [vmem:[#allocation11] sm:$0xff]   ;;  %v1915_v2 = vld [vmem:[#allocation11 + $0x8] sm:$0xff]  }
  0x95   :  { %1759 = vmatprep.subr.bf16.mxu0 %v2192_v0  ;;  %1763 = vmatprep.mubr.msk.bf16.mxu0 %vm2193_vm0, %v2192_v0  ;;  %v201_v3 = vld [vmem:[#allocation9] sm:$0xff]  ;;  %v202_v4 = vld [vmem:[#allocation9 + $0x8] sm:$0xff]  ;;  %v162_v5 = vld [vmem:[#allocation6] sm:$0xff]  ;;  %vm192_vm1 = vcmask 60416   ;;  %s2194_s7 = smov 112   ;;  %s2195_s11 = smov 120  }
  0x96   :  { %1767 = vmatprep.subr.bf16.mxu1 %v2192_v0  ;;  %1771 = vmatprep.mubr.msk.bf16.mxu1 %vm2193_vm0, %v2192_v0  ;;  %v184_v6 = vpack.c.bf16 %v162_v5, %v162_v5  ;;  %v203_v7 = vpack.c.bf16 %v201_v3, %v201_v3  ;;  %v271_v8 = vpack.c.bf16 %v202_v4, %v202_v4  ;;  %vm227_vm2 = vcmask 261120   ;;  %v163_v9 = vld [vmem:[#allocation6 + $0x8] sm:$0xff]  ;;  %v1687_v15 = vld [vmem:[#allocation12] ss:$0 sm:$0xff]  ;;  %s2196_s2 = smov 96   ;;  %s2197_s12 = smov 80  }
  0x97   :  { %1760 = vmatpush3.bf16.msra.mxu0 %v1914_v1  ;;  %1768 = vmatpush3.bf16.msra.mxu1 %v1914_v1  ;;  %vm153_vm3 = vcmask 64512   ;;  %v188_v10 = vpack.c.bf16 %v163_v9, %v163_v9  ;;  %s2198_s14 = smov 104   ;;  %vm136_vm4 = vcmask 7168   ;;  %vm983_vm5 = vcmask 1043456   ;;  %s2201_s15 = smov 16  }
  0x98   :  { %1761 = vmatprep.subr.bf16.mxu0 %v2192_v0  ;;  %1769 = vmatprep.subr.bf16.mxu1 %v2192_v0  ;;  %193 = vst.msk [vmem:[#allocation5] sm:$0xf] %vm192_vm1, %v184_v6  ;;  %s2202_s16 = smov 24   ;;  %vm1484_vm6 = vcmask 130048   ;;  %vm1486_vm7 = vcmask 195584   ;;  %s2204_s19 = smov [#allocation20]  }
  0x99   :  { %168 = vrot.lane.b32.xlu1 %v162_v5, %s2194_s7  ;;  %165 = vrot.lane.b32.xlu0 %v162_v5, %s2195_s11  ;;  %154 = vst.msk [vmem:[#allocation4] sm:$0xff] %vm153_vm3, %v2192_v0  ;;  %155 = vst.msk [vmem:[#allocation4 + $0x8] sm:$0xff] %vm153_vm3, %v2192_v0  ;;  %s1674_s20 = sshll.u32 %s2204_s19, 4  ;;  %vm1666_vm8 = vcmask 523264   ;;  %s1675_s20 = int_to_ptr.vmem [resolvable:$true] %s1674_s20 }
  0x9a   :  { %156 = vst.msk [vmem:[#allocation4 + $0x10] sm:$0xff] %vm153_vm3, %v2192_v0  ;;  %157 = vst.msk [vmem:[#allocation4 + $0x18] sm:$0xff] %vm153_vm3, %v2192_v0  ;;  %s2146_s21 = scalar_lea.vmem %s1675_s20, 128  ;;  %p2151_p9 = scmp.lt.s32.totalorder %s1675_s20, %s1675_s20 }
  0x9b   :  { %1762 = vmatpush3.bf16.msra.mxu0 %v1915_v2  ;;  %1770 = vmatpush3.bf16.msra.mxu1 %v1915_v2  ;;  %158 = vst.msk [vmem:[#allocation4 + $0x20] sm:$0xff] %vm153_vm3, %v2192_v0  ;;  %159 = vst.msk [vmem:[#allocation4 + $0x28] sm:$0xff] %vm153_vm3, %v2192_v0  ;;  %p2147_p8 = scmp.ne.s32.totalorder %s1675_s20, %s2146_s21  ;;  %p2152_p10 = scmp.lt.s32.totalorder %s2146_s21, %s2146_s21 }
  0x9c   :  { %1775 = vmatprep.subr.bf16.mxu0 %v2192_v0  ;;  %1781 = vmatprep.subr.bf16.mxu1 %v2192_v0  ;;  %160 = vst.msk [vmem:[#allocation4 + $0x30] sm:$0xff] %vm153_vm3, %v2192_v0  ;;  %161 = vst.msk [vmem:[#allocation4 + $0x38] sm:$0xff] %vm153_vm3, %v2192_v0 }
  0x9d   :  { %197 = vst.msk [vmem:[#allocation5 + $0x10] sm:$0xf] %vm192_vm1, %v188_v10  ;;  %p2153_p11 = por %p2152_p10, %p2151_p9 }
  0x9e   :  { %1764 = vmatmul.mubr.msk.bf16.vlgmr.msra.gmra.mrb[0].mxu0 %vm227_vm2, %v203_v7  ;;  %1772 = vmatmul.mubr.msk.bf16.vlgmr.msra.gmra.mrb[0].mxu1 %vm227_vm2, %v271_v8  ;;  %v2199_v7 = vmov -inf   ;;  %145 = vst.msk [vmem:[#allocation3] sm:$0xff] %vm136_vm4, %v2192_v0  ;;  %146 = vst.msk [vmem:[#allocation3 + $0x8] sm:$0xff] %vm136_vm4, %v2192_v0  ;;  %v2200_v8 = vmov 0  }
  0x9f   :  { %1777 = vmatprep.mubr.msk.bf16.mxu0 %vm2193_vm0, %v2192_v0  ;;  %1783 = vmatprep.mubr.msk.bf16.mxu1 %vm2193_vm0, %v2192_v0  ;;  %v343_v28 = vld [vmem:[#allocation5] sm:$0xf]  ;;  %137 = vst.msk [vmem:[#allocation2] sm:$0xff] %vm136_vm4, %v2199_v7  ;;  %138 = vst.msk [vmem:[#allocation2 + $0x8] sm:$0xff] %vm136_vm4, %v2199_v7  ;;  %p2154_p12 = pnand %p2153_p11, %p2147_p8 }
  0xa0   :  { %139 = vst.msk [vmem:[#allocation2 + $0x10] sm:$0xff] %vm136_vm4, %v2199_v7  ;;  %140 = vst.msk [vmem:[#allocation2 + $0x18] sm:$0xff] %vm136_vm4, %v2199_v7  ;;  %1912 = vset.pattern.permute.xlu1 %v2200_v8  ;;  %1913 = vset.pattern.permute.xlu0 %v2200_v8 }
  0xa1   :  { %141 = vst.msk [vmem:[#allocation2 + $0x20] sm:$0xff] %vm136_vm4, %v2199_v7  ;;  %142 = vst.msk [vmem:[#allocation2 + $0x28] sm:$0xff] %vm136_vm4, %v2199_v7 }
  0xa2   :  { %143 = vst.msk [vmem:[#allocation2 + $0x30] sm:$0xff] %vm136_vm4, %v2199_v7  ;;  %144 = vst.msk [vmem:[#allocation2 + $0x38] sm:$0xff] %vm136_vm4, %v2199_v7 }
  0xa3   :  { %147 = vst.msk [vmem:[#allocation3 + $0x10] sm:$0xff] %vm136_vm4, %v2192_v0  ;;  %148 = vst.msk [vmem:[#allocation3 + $0x18] sm:$0xff] %vm136_vm4, %v2192_v0 }
  0xa4   :  { %v347_v53 = vld [vmem:[#allocation5 + $0x10] sm:$0xf]  ;;  %149 = vst.msk [vmem:[#allocation3 + $0x20] sm:$0xff] %vm136_vm4, %v2192_v0  ;;  %150 = vst.msk [vmem:[#allocation3 + $0x28] sm:$0xff] %vm136_vm4, %v2192_v0 }
  0xa5   :  { %151 = vst.msk [vmem:[#allocation3 + $0x30] sm:$0xff] %vm136_vm4, %v2192_v0  ;;  %152 = vst.msk [vmem:[#allocation3 + $0x38] sm:$0xff] %vm136_vm4, %v2192_v0 }
  0xa8   :  { %v2569_v8 = vld [vmem:[#allocation2 + $0x20] sm:$0xff] }
 0x10b   :  { %v169_v11 = vpop.permute.xlu1 %168  ;;  %v166_v12 = vpop.permute.xlu0 %165 }
 0x10c   :  { %v186_v13 = vpack.c.bf16 %v169_v11, %v169_v11  ;;  %v185_v14 = vpack.c.bf16 %v166_v12, %v166_v12 }
 0x10e   :  { %195 = vst.msk [vmem:[#allocation5 + $0x8] sm:$0xf] %vm192_vm1, %v186_v13  ;;  %194 = vst.msk [vmem:[#allocation5 + $0x4] sm:$0xf] %vm192_vm1, %v185_v14 }
 0x115   :  { %v345_v41 = vld [vmem:[#allocation5 + $0x8] sm:$0xf]  ;;  %v344_v44 = vld [vmem:[#allocation5 + $0x4] sm:$0xf] }
 0x171   :  { %v265_v16 = vpop.f32.mrb[0].mxu0  ;;  %v309_v17 = vpop.f32.mrb[0].mxu1 }
 0x172   :  { %v266_v18 = vadd.f32 %v1687_v15, %v265_v16  ;;  %v1765_v19 = vpop.f32.mrb[1].mxu0  ;;  %v1773_v20 = vpop.f32.mrb[1].mxu1  ;;  %v310_v27 = vadd.f32 %v1687_v15, %v309_v17 }
 0x173   :  { %v268_v21 = vpop.f32.mrb[2].mxu0  ;;  %v312_v22 = vpop.f32.mrb[2].mxu1 }
 0x174   :  { %v1766_v23 = vpop.f32.mrb[3].mxu0  ;;  %319 = vrot.lane.b32.xlu1 %v266_v18, %s2196_s2  ;;  %316 = vrot.lane.b32.xlu0 %v266_v18, %s2194_s7  ;;  %v2406_v24 = vpack.c.bf16 %v266_v18, %v266_v18  ;;  %v1774_v25 = vpop.f32.mrb[3].mxu1  ;;  %v2430_v39 = vpack.c.bf16 %v310_v27, %v310_v27 }
 0x176   :  { %v356_v26 = vsel %vm153_vm3, %v2406_v24, 0  ;;  %v540_v46 = vsel %vm153_vm3, %v2430_v39, 0 }
 0x177   :  { %1776 = vmatpush3.bf16.xpose.msra.mxu0 %v356_v26 }
 0x178   :  { %322 = vrot.lane.b32.xlu1 %v266_v18, %s2197_s12  ;;  %171 = vrot.lane.b32.xlu0 %v162_v5, %s2198_s14 }
 0x179   :  { %1787 = vmatprep.subr.bf16.mxu0 %v2192_v0 }
 0x17c   :  { %326 = vrot.lane.b32.xlu1 %v310_v27, %s2194_s7  ;;  %175 = vrot.lane.b32.xlu0 %v163_v9, %s2195_s11 }
 0x17e   :  { %1778 = vmatmul.mubr.msk.bf16.vlgmr.msra.gmra.mrb[4].mxu0 %vm153_vm3, %v343_v28 }
 0x17f   :  { %1789 = vmatprep.mubr.msk.bf16.mxu0 %vm2193_vm0, %v2192_v0 }
 0x180   :  { %329 = vrot.lane.b32.xlu1 %v310_v27, %s2196_s2  ;;  %178 = vrot.lane.b32.xlu0 %v163_v9, %s2194_s7 }
 0x184   :  { %332 = vrot.lane.b32.xlu1 %v310_v27, %s2197_s12  ;;  %181 = vrot.lane.b32.xlu0 %v163_v9, %s2198_s14 }
 0x1e6   :  { %v320_v29 = vpop.permute.xlu1 %319  ;;  %v317_v30 = vpop.permute.xlu0 %316 }
 0x1e7   :  { %v2417_v31 = vpack.c.bf16 %v320_v29, %v320_v29  ;;  %v2419_v32 = vpack.c.bf16 %v317_v30, %v317_v30 }
 0x1e9   :  { %v448_v33 = vsel %vm153_vm3, %v2417_v31, 0  ;;  %v402_v34 = vsel %vm153_vm3, %v2419_v32, 0 }
 0x1ea   :  { %v323_v35 = vpop.permute.xlu1 %322  ;;  %1782 = vmatpush3.bf16.xpose.msra.mxu1 %v402_v34  ;;  %1788 = vmatpush3.bf16.xpose.msra.mxu0 %v448_v33  ;;  %v172_v36 = vpop.permute.xlu0 %171 }
 0x1eb   :  { %v187_v37 = vpack.c.bf16 %v172_v36, %v172_v36  ;;  %1793 = vmatprep.subr.bf16.mxu1 %v2192_v0  ;;  %1799 = vmatprep.subr.bf16.mxu0 %v2192_v0  ;;  %v2427_v38 = vpack.c.bf16 %v323_v35, %v323_v35 }
 0x1ed   :  { %196 = vst.msk [vmem:[#allocation5 + $0xc] sm:$0xf] %vm192_vm1, %v187_v37  ;;  %v494_v45 = vsel %vm153_vm3, %v2427_v38, 0 }
 0x1ee   :  { %v327_v40 = vpop.permute.xlu1 %326  ;;  %v176_v42 = vpop.permute.xlu0 %175 }
 0x1ef   :  { %v189_v43 = vpack.c.bf16 %v176_v42, %v176_v42  ;;  %v2439_v49 = vpack.c.bf16 %v327_v40, %v327_v40 }
 0x1f1   :  { %1784 = vmatmul.mubr.msk.bf16.vlgmr.msra.gmra.mrb[4].mxu1 %vm153_vm3, %v344_v44  ;;  %1790 = vmatmul.mubr.msk.bf16.vlgmr.msra.gmra.mrb[8].mxu0 %vm153_vm3, %v345_v41  ;;  %198 = vst.msk [vmem:[#allocation5 + $0x14] sm:$0xf] %vm192_vm1, %v189_v43  ;;  %v586_v55 = vsel %vm153_vm3, %v2439_v49, 0 }
 0x1f2   :  { %v330_v47 = vpop.permute.xlu1 %329  ;;  %1794 = vmatpush3.bf16.xpose.msra.mxu1 %v494_v45  ;;  %1800 = vmatpush3.bf16.xpose.msra.mxu0 %v540_v46  ;;  %v179_v48 = vpop.permute.xlu0 %178 }
 0x1f3   :  { %v2441_v50 = vpack.c.bf16 %v330_v47, %v330_v47  ;;  %v190_v51 = vpack.c.bf16 %v179_v48, %v179_v48  ;;  %1795 = vmatprep.mubr.msk.bf16.mxu1 %vm2193_vm0, %v2192_v0  ;;  %1801 = vmatprep.mubr.msk.bf16.mxu0 %vm2193_vm0, %v2192_v0 }
 0x1f4   :  { %1805 = vmatprep.subr.bf16.mxu1 %v2192_v0  ;;  %1811 = vmatprep.subr.bf16.mxu0 %v2192_v0  ;;  %v346_v52 = vld [vmem:[#allocation5 + $0xc] sm:$0xf] }
 0x1f5   :  { %199 = vst.msk [vmem:[#allocation5 + $0x18] sm:$0xf] %vm192_vm1, %v190_v51  ;;  %v632_v56 = vsel %vm153_vm3, %v2441_v50, 0 }
 0x1f6   :  { %v182_v54 = vpop.permute.xlu0 %181  ;;  %v333_v58 = vpop.permute.xlu1 %332 }
 0x1f7   :  { %v191_v57 = vpack.c.bf16 %v182_v54, %v182_v54  ;;  %v2463_v59 = vpack.c.bf16 %v333_v58, %v333_v58  ;;  %v2533_v58 = vld [vmem:[#allocation2] sm:$0xff] }
 0x1f8   :  { %v348_v60 = vld [vmem:[#allocation5 + $0x14] sm:$0xf] }
 0x1f9   :  { %1796 = vmatmul.mubr.msk.bf16.vlgmr.msra.gmra.mrb[8].mxu1 %vm153_vm3, %v346_v52  ;;  %1802 = vmatmul.mubr.msk.bf16.vlgmr.msra.gmra.mrb[12].mxu0 %vm153_vm3, %v347_v53  ;;  %200 = vst.msk [vmem:[#allocation5 + $0x1c] sm:$0xf] %vm192_vm1, %v191_v57  ;;  %v678_v62 = vsel %vm153_vm3, %v2463_v59, 0 }
 0x1fa   :  { %1806 = vmatpush3.bf16.xpose.msra.mxu1 %v586_v55  ;;  %1812 = vmatpush3.bf16.xpose.msra.mxu0 %v632_v56 }
 0x1fb   :  { %1807 = vmatprep.mubr.msk.bf16.mxu1 %vm2193_vm0, %v2192_v0  ;;  %1813 = vmatprep.mubr.msk.bf16.mxu0 %vm2193_vm0, %v2192_v0 }
 0x1fc   :  { %1817 = vmatprep.subr.bf16.mxu1 %v2192_v0  ;;  %1823 = vmatprep.subr.bf16.mxu0 %v2192_v0  ;;  %v349_v61 = vld [vmem:[#allocation5 + $0x18] sm:$0xf] }
 0x200   :  { %v350_v63 = vld [vmem:[#allocation5 + $0x1c] sm:$0xf] }
 0x201   :  { %1808 = vmatmul.mubr.msk.bf16.vlgmr.msra.gmra.mrb[12].mxu1 %vm153_vm3, %v348_v60  ;;  %1814 = vmatmul.mubr.msk.bf16.vlgmr.msra.gmra.mrb[16].mxu0 %vm153_vm3, %v349_v61 }
 0x202   :  { %1818 = vmatpush3.bf16.xpose.msra.mxu1 %v678_v62  ;;  %1819 = vmatprep.mubr.msk.bf16.mxu1 %vm2193_vm0, %v2192_v0 }
 0x203   :  { %1829 = vmatprep.subr.bf16.mxu1 %v2192_v0  ;;  %1825 = vmatprep.mubr.msk.bf16.mxu0 %vm2193_vm0, %v2192_v0 }
 0x209   :  { %1820 = vmatmul.mubr.msk.bf16.vlgmr.msra.gmra.mrb[16].mxu1 %vm153_vm3, %v350_v63  ;;  %v2547_v63 = vld [vmem:[#allocation2 + $0x8] sm:$0xff] }
 0x20a   :  { %1831 = vmatprep.mubr.msk.bf16.mxu1 %vm2193_vm0, %v2192_v0 }
 0x251   :  { %v392_v1 = vpop.f32.mrb[4].mxu0 }
 0x252   :  { %v2477_v2 = vmul.f32 0.35355338, %v392_v1  ;;  %v1779_v3 = vpop.f32.mrb[5].mxu0  ;;  %v2549_v1 = vld [vmem:[#allocation2 + $0x10] sm:$0xff] }
 0x253   :  { %v395_v4 = vpop.f32.mrb[6].mxu0 }
 0x254   :  { %v736_v5 = vsel %vm153_vm3, %v2477_v2, -inf  ;;  %v1780_v6 = vpop.f32.mrb[7].mxu0 }
 0x255   :  { %737 = vmax.xlane.f32.xlu0 %v736_v5 }
 0x2c4   :  { %v438_v9 = vpop.f32.mrb[4].mxu1  ;;  %v484_v10 = vpop.f32.mrb[8].mxu0 }
 0x2c5   :  { %v2505_v11 = vmul.f32 0.35355338, %v438_v9  ;;  %v2507_v12 = vmul.f32 0.35355338, %v484_v10  ;;  %v1785_v13 = vpop.f32.mrb[5].mxu1  ;;  %v1791_v14 = vpop.f32.mrb[9].mxu0 }
 0x2c6   :  { %v441_v15 = vpop.f32.mrb[6].mxu1  ;;  %v487_v16 = vpop.f32.mrb[10].mxu0 }
 0x2c7   :  { %v1786_v17 = vpop.f32.mrb[7].mxu1  ;;  %v1792_v18 = vpop.f32.mrb[11].mxu0  ;;  %v739_v19 = vsel %vm153_vm3, %v2505_v11, -inf  ;;  %v742_v20 = vsel %vm153_vm3, %v2507_v12, -inf  ;;  %v2590_v16 = vld [vmem:[#allocation2 + $0x28] sm:$0xff] }
 0x2c8   :  { %740 = vmax.xlane.f32.xlu1 %v739_v19  ;;  %743 = vmax.xlane.f32.xlu0 %v742_v20  ;;  %v2592_v17 = vld [vmem:[#allocation2 + $0x30] sm:$0xff] }
 0x2cc   :  { %v530_v21 = vpop.f32.mrb[8].mxu1  ;;  %v576_v22 = vpop.f32.mrb[12].mxu0 }
 0x2cd   :  { %v2513_v23 = vmul.f32 0.35355338, %v530_v21  ;;  %v1797_v25 = vpop.f32.mrb[9].mxu1  ;;  %v2515_v26 = vmul.f32 0.35355338, %v576_v22  ;;  %v1803_v27 = vpop.f32.mrb[13].mxu0 }
 0x2ce   :  { %v533_v28 = vpop.f32.mrb[10].mxu1  ;;  %v579_v29 = vpop.f32.mrb[14].mxu0  ;;  %v2613_v27 = vld [vmem:[#allocation2 + $0x38] sm:$0xff] }
 0x2cf   :  { %v1798_v30 = vpop.f32.mrb[11].mxu1  ;;  %v745_v33 = vsel %vm153_vm3, %v2513_v23, -inf  ;;  %v1804_v34 = vpop.f32.mrb[15].mxu0  ;;  %v748_v35 = vsel %vm153_vm3, %v2515_v26, -inf }
 0x2d0   :  { %746 = vmax.xlane.f32.xlu0 %v745_v33  ;;  %749 = vmax.xlane.f32.xlu1 %v748_v35 }
 0x2d4   :  { %v622_v36 = vpop.f32.mrb[12].mxu1  ;;  %v668_v37 = vpop.f32.mrb[16].mxu0 }
 0x2d5   :  { %v2521_v40 = vmul.f32 0.35355338, %v622_v36  ;;  %v2523_v41 = vmul.f32 0.35355338, %v668_v37  ;;  %v1809_v42 = vpop.f32.mrb[13].mxu1  ;;  %v1815_v43 = vpop.f32.mrb[17].mxu0 }
 0x2d6   :  { %v625_v44 = vpop.f32.mrb[14].mxu1  ;;  %v671_v45 = vpop.f32.mrb[18].mxu0 }
 0x2d7   :  { %v1810_v46 = vpop.f32.mrb[15].mxu1  ;;  %v751_v47 = vsel %vm153_vm3, %v2521_v40, -inf  ;;  %v754_v48 = vsel %vm153_vm3, %v2523_v41, -inf  ;;  %v1816_v51 = vpop.f32.mrb[19].mxu0 }
 0x2d8   :  { %752 = vmax.xlane.f32.xlu0 %v751_v47  ;;  %755 = vmax.xlane.f32.xlu1 %v754_v48 }
 0x2dc   :  { %v714_v52 = vpop.f32.mrb[16].mxu1 }
 0x2dd   :  { %v2529_v53 = vmul.f32 0.35355338, %v714_v52  ;;  %v1821_v54 = vpop.f32.mrb[17].mxu1 }
 0x2de   :  { %v717_v55 = vpop.f32.mrb[18].mxu1 }
 0x2df   :  { %v1822_v56 = vpop.f32.mrb[19].mxu1  ;;  %v757_v57 = vsel %vm153_vm3, %v2529_v53, -inf }
 0x2e0   :  { %758 = vmax.xlane.f32.xlu0 %v757_v57 }
 0x2e2   :  { %v738_v60 = vpop.xlane.xlu0 %737 }
 0x2e3   :  { %v2536_v61 = vmax.f32 %v2533_v58, %v738_v60 }
 0x2e5   :  { %v768_v62 = vsub.f32 %v2533_v58, %v2536_v61  ;;  %1386 = vst.msk [vmem:[#allocation2] sm:$0xff] %vm136_vm4, %v2536_v61 }
 0x2e9   :  { %794 = vperm.xlu1 %1912, %v2536_v61   ;;  %v915_v61 = vld [vmem:[#allocation4 + $0x10] sm:$0xff] }
 0x2ed   :  { %978 = vrot.lane.b32.xlu1 %v2406_v24, %s2195_s11 }
 0x2f1   :  { %1028 = vrot.lane.b32.xlu1 %v2419_v32, %s2195_s11  ;;  %v2567_v32 = vld [vmem:[#allocation2 + $0x18] sm:$0xff] }
 0x355   :  { %v741_v3 = vpop.xlane.xlu1 %740  ;;  %v744_v4 = vpop.xlane.xlu0 %743 }
 0x356   :  { %v2552_v5 = vmax.f32 %v2547_v63, %v741_v3  ;;  %v2555_v6 = vmax.f32 %v2549_v1, %v744_v4 }
 0x358   :  { %v769_v7 = vsub.f32 %v2547_v63, %v2552_v5  ;;  %1387 = vst.msk [vmem:[#allocation2 + $0x8] sm:$0xff] %vm136_vm4, %v2552_v5  ;;  %v770_v24 = vsub.f32 %v2549_v1, %v2555_v6  ;;  %1388 = vst.msk [vmem:[#allocation2 + $0x10] sm:$0xff] %vm136_vm4, %v2555_v6  ;;  %799 = vperm.xlu0 %1913, %v2552_v5   ;;  %804 = vperm.xlu1 %1912, %v2555_v6  }
 0x35c   :  { %1077 = vrot.lane.b32.xlu0 %v2417_v31, %s2195_s11 }
 0x35d   :  { %v747_v9 = vpop.xlane.xlu0 %746  ;;  %v750_v10 = vpop.xlane.xlu1 %749 }
 0x35e   :  { %v2574_v13 = vmax.f32 %v2567_v32, %v747_v9  ;;  %v2577_v14 = vmax.f32 %v2569_v8, %v750_v10 }
 0x360   :  { %v771_v15 = vsub.f32 %v2567_v32, %v2574_v13  ;;  %1389 = vst.msk [vmem:[#allocation2 + $0x18] sm:$0xff] %vm136_vm4, %v2574_v13  ;;  %1175 = vrot.lane.b32.xlu0 %v2430_v39, %s2195_s11  ;;  %809 = vperm.xlu1 %1912, %v2574_v13   ;;  %v772_v31 = vsub.f32 %v2569_v8, %v2577_v14  ;;  %1390 = vst.msk [vmem:[#allocation2 + $0x20] sm:$0xff] %vm136_vm4, %v2577_v14  ;;  %v862_v8 = vld [vmem:[#allocation3 + $0x30] sm:$0xff]  ;;  %v863_v32 = vld [vmem:[#allocation3 + $0x38] sm:$0xff] }
 0x361   :  { %v860_v13 = vld [vmem:[#allocation3 + $0x20] sm:$0xff] }
 0x364   :  { %1273 = vrot.lane.b32.xlu0 %v2441_v50, %s2195_s11  ;;  %814 = vperm.xlu1 %1912, %v2577_v14  }
 0x365   :  { %v753_v18 = vpop.xlane.xlu0 %752  ;;  %v756_v19 = vpop.xlane.xlu1 %755 }
 0x366   :  { %v2598_v39 = vmax.f32 %v2590_v16, %v753_v18  ;;  %v2601_v20 = vmax.f32 %v2592_v17, %v756_v19 }
 0x368   :  { %v773_v21 = vsub.f32 %v2590_v16, %v2598_v39  ;;  %1391 = vst.msk [vmem:[#allocation2 + $0x28] sm:$0xff] %vm136_vm4, %v2598_v39  ;;  %v774_v22 = vsub.f32 %v2592_v17, %v2601_v20  ;;  %1392 = vst.msk [vmem:[#allocation2 + $0x30] sm:$0xff] %vm136_vm4, %v2601_v20  ;;  %819 = vperm.xlu1 %1912, %v2598_v39   ;;  %v784_v16 = vmul.f32 1.442695, %v772_v31  ;;  %v778_v39 = vmul.f32 1.442695, %v769_v7 }
 0x369   :  { %v795_v50 = vpop.permute.xlu1 %794 }
 0x36a   :  { %v832_v25 = vsub.f32 %v2477_v2, %v795_v50 }
 0x36c   :  { %v840_v28 = vmul.f32 1.442695, %v832_v25  ;;  %824 = vperm.xlu1 %1912, %v2601_v20  }
 0x36d   :  { %v759_v29 = vpop.xlane.xlu0 %758  ;;  %v979_v30 = vpop.permute.xlu1 %978 }
 0x36e   :  { %1918 = vpow2.f32 %v840_v28  ;;  %v2617_v33 = vmax.f32 %v2613_v27, %v759_v29  ;;  %v985_v34 = vsel %vm983_vm5, %v979_v30, 0 }
 0x36f   :  { %1824 = vmatpush3.bf16.msra.mxu0 %v985_v34 }
 0x370   :  { %v775_v35 = vsub.f32 %v2613_v27, %v2617_v33  ;;  %1393 = vst.msk [vmem:[#allocation2 + $0x38] sm:$0xff] %vm136_vm4, %v2617_v33  ;;  %829 = vperm.xlu1 %1912, %v2617_v33   ;;  %1835 = vmatprep.subr.bf16.mxu0 %v2192_v0  ;;  %v861_v27 = vld [vmem:[#allocation3 + $0x28] sm:$0xff]  ;;  %v780_v33 = vmul.f32 1.442695, %v770_v24 }
 0x371   :  { %v1029_v2 = vpop.permute.xlu1 %1028 }
 0x372   :  { %v1034_v36 = vsel %vm983_vm5, %v1029_v2, 0  ;;  %v790_v17 = vmul.f32 1.442695, %v775_v35 }
 0x373   :  { %1830 = vmatpush3.bf16.msra.mxu1 %v1034_v36 }
 0x374   :  { %1126 = vrot.lane.b32.xlu1 %v2427_v38, %s2195_s11  ;;  %1841 = vmatprep.subr.bf16.mxu1 %v2192_v0 }
 0x378   :  { %v2630_v37 = vpop.eup %1918  ;;  %1224 = vrot.lane.b32.xlu1 %v2439_v49, %s2195_s11 }
 0x379   :  { %v969_v42 = vpack.c.bf16 %v2630_v37, %v2630_v37 }
 0x37b   :  { %1826 = vmatmul.mubr.msk.bf16.vlgmr.msra.gmra.mrb[20].mxu0 %vm153_vm3, %v969_v42 }
 0x37c   :  { %1322 = vrot.lane.b32.xlu1 %v2463_v59, %s2195_s11  ;;  %1837 = vmatprep.mubr.msk.bf16.mxu0 %vm2193_vm0, %v2192_v0 }
 0x3d7   :  { %v800_v43 = vpop.permute.xlu0 %799  ;;  %v805_v38 = vpop.permute.xlu1 %804 }
 0x3d8   :  { %v833_v44 = vsub.f32 %v2505_v11, %v800_v43  ;;  %v834_v45 = vsub.f32 %v2507_v12, %v805_v38 }
 0x3da   :  { %v842_v46 = vmul.f32 1.442695, %v833_v44  ;;  %v844_v47 = vmul.f32 1.442695, %v834_v45 }
 0x3db   :  { %v1078_v49 = vpop.permute.xlu0 %1077 }
 0x3dc   :  { %1920 = vpow2.f32 %v842_v46  ;;  %v1083_v48 = vsel %vm983_vm5, %v1078_v49, 0 }
 0x3dd   :  { %1922 = vpow2.f32 %v844_v47  ;;  %1836 = vmatpush3.bf16.msra.mxu0 %v1083_v48 }
 0x3de   :  { %1847 = vmatprep.subr.bf16.mxu0 %v2192_v0 }
 0x3df   :  { %v810_v59 = vpop.permute.xlu1 %809  ;;  %v1176_v57 = vpop.permute.xlu0 %1175 }
 0x3e0   :  { %v835_v51 = vsub.f32 %v2513_v23, %v810_v59 }
 0x3e2   :  { %v846_v55 = vmul.f32 1.442695, %v835_v51 }
 0x3e3   :  { %v815_v52 = vpop.permute.xlu1 %814  ;;  %v1274_v28 = vpop.permute.xlu0 %1273 }
 0x3e4   :  { %v836_v54 = vsub.f32 %v2515_v26, %v815_v52  ;;  %v1181_v26 = vsel %vm983_vm5, %v1176_v57, 0  ;;  %v1279_v42 = vsel %vm983_vm5, %v1274_v28, 0  ;;  %v788_v57 = vmul.f32 1.442695, %v774_v22 }
 0x3e6   :  { %v2647_v11 = vpop.eup %1920  ;;  %v848_v12 = vmul.f32 1.442695, %v836_v54 }
 0x3e7   :  { %v2649_v56 = vpop.eup %1922  ;;  %v820_v60 = vpop.permute.xlu1 %819  ;;  %v970_v3 = vpack.c.bf16 %v2647_v11, %v2647_v11 }
 0x3e8   :  { %1924 = vpow2.f32 %v848_v12  ;;  %v837_v4 = vsub.f32 %v2521_v40, %v820_v60  ;;  %v971_v23 = vpack.c.bf16 %v2649_v56, %v2649_v56  ;;  %v875_v12 = vsel %vm153_vm3, %v2647_v11, 0.0 }
 0x3e9   :  { %1926 = vpow2.f32 %v846_v55  ;;  %1832 = vmatmul.mubr.msk.bf16.vlgmr.msra.gmra.mrb[20].mxu1 %vm153_vm3, %v970_v3  ;;  %v878_v60 = vsel %vm153_vm3, %v2649_v56, 0.0  ;;  %v786_v11 = vmul.f32 1.442695, %v773_v21  ;;  %v782_v21 = vmul.f32 1.442695, %v771_v15 }
 0x3ea   :  { %v850_v9 = vmul.f32 1.442695, %v837_v4  ;;  %1838 = vmatmul.mubr.msk.bf16.vlgmr.msra.gmra.mrb[24].mxu0 %vm153_vm3, %v971_v23  ;;  %1843 = vmatprep.mubr.msk.bf16.mxu1 %vm2193_vm0, %v2192_v0 }
 0x3eb   :  { %1848 = vmatpush3.bf16.msra.mxu0 %v1181_v26  ;;  %v825_v10 = vpop.permute.xlu1 %824  ;;  %1849 = vmatprep.mubr.msk.bf16.mxu0 %vm2193_vm0, %v2192_v0 }
 0x3ec   :  { %1928 = vpow2.f32 %v850_v9  ;;  %v838_v40 = vsub.f32 %v2523_v41, %v825_v10  ;;  %1859 = vmatprep.subr.bf16.mxu0 %v2192_v0 }
 0x3ee   :  { %v852_v18 = vmul.f32 1.442695, %v838_v40 }
 0x3ef   :  { %v830_v19 = vpop.permute.xlu1 %829 }
 0x3f0   :  { %1930 = vpow2.f32 %v852_v18  ;;  %v839_v50 = vsub.f32 %v2529_v53, %v830_v19  ;;  %v857_v19 = vld [vmem:[#allocation3 + $0x8] sm:$0xff] }
 0x3f2   :  { %v1925_v25 = vpop.eup %1924  ;;  %v854_v29 = vmul.f32 1.442695, %v839_v50  ;;  %v859_v50 = vld [vmem:[#allocation3 + $0x18] sm:$0xff] }
 0x3f3   :  { %v1927_v30 = vpop.eup %1926  ;;  %v1127_v34 = vpop.permute.xlu1 %1126  ;;  %v973_v2 = vpack.c.bf16 %v1925_v25, %v1925_v25  ;;  %v884_v59 = vsel %vm153_vm3, %v1925_v25, 0.0 }
 0x3f4   :  { %1932 = vpow2.f32 %v854_v29  ;;  %v1132_v36 = vsel %vm983_vm5, %v1127_v34, 0  ;;  %v972_v43 = vpack.c.bf16 %v1927_v30, %v1927_v30  ;;  %v881_v55 = vsel %vm153_vm3, %v1927_v30, 0.0 }
 0x3f5   :  { %1842 = vmatpush3.bf16.msra.mxu1 %v1132_v36  ;;  %1850 = vmatmul.mubr.msk.bf16.vlgmr.msra.gmra.mrb[28].mxu0 %vm153_vm3, %v973_v2  ;;  %1934 = vpow2.f32 %v788_v57 }
 0x3f6   :  { %v1929_v41 = vpop.eup %1928  ;;  %1860 = vmatpush3.bf16.msra.mxu0 %v1279_v42  ;;  %1853 = vmatprep.subr.bf16.mxu1 %v2192_v0  ;;  %1936 = vpow2.f32 %v786_v11 }
 0x3f7   :  { %v1225_v53 = vpop.permute.xlu1 %1224  ;;  %v887_v38 = vsel %vm153_vm3, %v1929_v41, 0.0  ;;  %1861 = vmatprep.mubr.msk.bf16.mxu0 %vm2193_vm0, %v2192_v0  ;;  %1871 = vmatprep.subr.bf16.mxu0 %v2192_v0  ;;  %v974_v52 = vpack.c.bf16 %v1929_v41, %v1929_v41  ;;  %1938 = vpow2.f32 %v790_v17  ;;  %v858_v41 = vld [vmem:[#allocation3 + $0x10] sm:$0xff] }
 0x3f8   :  { %v1230_v44 = vsel %vm983_vm5, %v1225_v53, 0  ;;  %888 = vadd.xlane.f32.xlu0 %v887_v38  ;;  %1844 = vmatmul.mubr.msk.bf16.vlgmr.msra.gmra.mrb[24].mxu1 %vm153_vm3, %v972_v43  ;;  %1940 = vpow2.f32 %v784_v16 }
 0x3f9   :  { %1854 = vmatpush3.bf16.msra.mxu1 %v1230_v44  ;;  %1855 = vmatprep.mubr.msk.bf16.mxu1 %vm2193_vm0, %v2192_v0  ;;  %1942 = vpow2.f32 %v778_v39 }
 0x3fa   :  { %v1931_v45 = vpop.eup %1930  ;;  %1865 = vmatprep.subr.bf16.mxu1 %v2192_v0  ;;  %1944 = vpow2.f32 %v782_v21 }
 0x3fb   :  { %v890_v46 = vsel %vm153_vm3, %v1931_v45, 0.0  ;;  %v975_v47 = vpack.c.bf16 %v1931_v45, %v1931_v45  ;;  %v1323_v48 = vpop.permute.xlu1 %1322  ;;  %1946 = vpow2.f32 %v780_v33  ;;  %v918_v33 = vld [vmem:[#allocation4 + $0x28] sm:$0xff] }
 0x3fc   :  { %891 = vadd.xlane.f32.xlu1 %v890_v46  ;;  %v1328_v54 = vsel %vm983_vm5, %v1323_v48, 0 }
 0x3fd   :  { %1862 = vmatmul.mubr.msk.bf16.vlgmr.msra.gmra.mrb[32].mxu0 %vm153_vm3, %v975_v47 }
 0x3fe   :  { %v1933_v49 = vpop.eup %1932  ;;  %1875 = vmatprep.mubr.msk.bf16.mxu0 %vm2193_vm0, %v2192_v0 }
 0x3ff   :  { %v893_v51 = vsel %vm153_vm3, %v1933_v49, 0.0  ;;  %v976_v3 = vpack.c.bf16 %v1933_v49, %v1933_v49  ;;  %v1935_v20 = vpop.eup %1934 }
 0x400   :  { %885 = vadd.xlane.f32.xlu1 %v884_v59  ;;  %894 = vadd.xlane.f32.xlu0 %v893_v51  ;;  %v1937_v22 = vpop.eup %1936  ;;  %v870_v63 = vmul.f32 %v1935_v20, %v862_v8  ;;  %v872_v51 = vsel %vm153_vm3, %v2630_v37, 0.0 }
 0x401   :  { %1856 = vmatmul.mubr.msk.bf16.vlgmr.msra.gmra.mrb[28].mxu1 %vm153_vm3, %v974_v52  ;;  %v1939_v56 = vpop.eup %1938  ;;  %v869_v35 = vmul.f32 %v1937_v22, %v861_v27 }
 0x402   :  { %1866 = vmatpush3.bf16.msra.mxu1 %v1328_v54  ;;  %1867 = vmatprep.mubr.msk.bf16.mxu1 %vm2193_vm0, %v2192_v0  ;;  %v1941_v5 = vpop.eup %1940  ;;  %v871_v40 = vmul.f32 %v1939_v56, %v863_v32 }
 0x403   :  { %1879 = vmatprep.subr.bf16.mxu1 %v2192_v0  ;;  %v1943_v31 = vpop.eup %1942  ;;  %v868_v1 = vmul.f32 %v1941_v5, %v860_v13 }
 0x404   :  { %882 = vadd.xlane.f32.xlu1 %v881_v55  ;;  %876 = vadd.xlane.f32.xlu0 %v875_v12  ;;  %v1945_v6 = vpop.eup %1944  ;;  %v865_v30 = vmul.f32 %v1943_v31, %v857_v19 }
 0x405   :  { %v867_v34 = vmul.f32 %v1945_v6, %v859_v50  ;;  %v1947_v2 = vpop.eup %1946 }
 0x406   :  { %v866_v44 = vmul.f32 %v1947_v2, %v858_v41 }
 0x408   :  { %879 = vadd.xlane.f32.xlu0 %v878_v60 }
 0x409   :  { %1868 = vmatmul.mubr.msk.bf16.vlgmr.msra.gmra.mrb[32].mxu1 %vm153_vm3, %v976_v3 }
 0x40a   :  { %1883 = vmatprep.mubr.msk.bf16.mxu1 %vm2193_vm0, %v2192_v0 }
 0x415   :  { %953 = vperm.xlu1 %1912, %v1935_v20  }
 0x41e   :  { %948 = vperm.xlu0 %1913, %v1937_v22  }
 0x422   :  { %958 = vperm.xlu0 %1913, %v1939_v56  }
 0x44e   :  { %v2707_v4 = vpop.f32.mrb[20].mxu0 }
 0x44f   :  { %v1827_v23 = vpop.f32.mrb[21].mxu0 }
 0x450   :  { %v1024_v26 = vpop.f32.mrb[22].mxu0 }
 0x451   :  { %v1828_v9 = vpop.f32.mrb[23].mxu0  ;;  %v919_v26 = vld [vmem:[#allocation4 + $0x30] sm:$0xff] }
 0x485   :  { %v889_v10 = vpop.xlane.xlu0 %888 }
 0x486   :  { %v901_v14 = vadd.f32 %v889_v10, %v869_v35 }
 0x488   :  { %910 = vst.msk [vmem:[#allocation3 + $0x28] sm:$0xff] %vm136_vm4, %v901_v14 }
 0x489   :  { %v892_v7 = vpop.xlane.xlu1 %891 }
 0x48a   :  { %v902_v15 = vadd.f32 %v892_v7, %v870_v63 }
 0x48c   :  { %911 = vst.msk [vmem:[#allocation3 + $0x30] sm:$0xff] %vm136_vm4, %v902_v15 }
 0x48d   :  { %v895_v24 = vpop.xlane.xlu0 %894  ;;  %v886_v18 = vpop.xlane.xlu1 %885 }
 0x48e   :  { %v903_v25 = vadd.f32 %v895_v24, %v871_v40  ;;  %v900_v28 = vadd.f32 %v886_v18, %v868_v1  ;;  %v920_v1 = vld [vmem:[#allocation4 + $0x38] sm:$0xff] }
 0x48f   :  { %v1410_v29 = vld [vmem:[#allocation3 + $0x28] sm:$0xff] }
 0x490   :  { %912 = vst.msk [vmem:[#allocation3 + $0x38] sm:$0xff] %vm136_vm4, %v903_v25  ;;  %909 = vst.msk [vmem:[#allocation3 + $0x20] sm:$0xff] %vm136_vm4, %v900_v28  ;;  %1440 = vperm.xlu1 %1912, %v1410_v29  }
 0x491   :  { %v877_v36 = vpop.xlane.xlu0 %876  ;;  %v883_v42 = vpop.xlane.xlu1 %882 }
 0x492   :  { %v897_v43 = vadd.f32 %v877_v36, %v865_v30  ;;  %v899_v53 = vadd.f32 %v883_v42, %v867_v34  ;;  %v1916_v34 = vld [vmem:[#allocation14] sm:$0xff]   ;;  %v1917_v36 = vld [vmem:[#allocation14 + $0x8] sm:$0xff]   ;;  %v914_v42 = vld [vmem:[#allocation4 + $0x8] sm:$0xff] }
 0x493   :  { %v1411_v38 = vld [vmem:[#allocation3 + $0x30] sm:$0xff]  ;;  %1880 = vmatpush3.bf16.msra.mxu1 %v1916_v34  ;;  %1872 = vmatpush3.bf16.msra.mxu0 %v1916_v34 }
 0x494   :  { %906 = vst.msk [vmem:[#allocation3 + $0x8] sm:$0xff] %vm136_vm4, %v897_v43  ;;  %908 = vst.msk [vmem:[#allocation3 + $0x18] sm:$0xff] %vm136_vm4, %v899_v53  ;;  %1445 = vperm.xlu1 %1912, %v1411_v38   ;;  %1881 = vmatprep.subr.bf16.mxu1 %v2192_v0  ;;  %v776_v43 = vmul.f32 1.442695, %v768_v62 }
 0x495   :  { %v880_v45 = vpop.xlane.xlu0 %879  ;;  %v954_v9 = vpop.permute.xlu1 %953  ;;  %1873 = vmatprep.subr.bf16.mxu0 %v2192_v0 }
 0x496   :  { %v898_v46 = vadd.f32 %v880_v45, %v866_v44  ;;  %v967_v27 = vmul.f32 %v954_v9, %v919_v26 }
 0x497   :  { %v1412_v47 = vld [vmem:[#allocation3 + $0x38] sm:$0xff]  ;;  %v1409_v48 = vld [vmem:[#allocation3 + $0x20] sm:$0xff]  ;;  %1882 = vmatpush3.bf16.msra.mxu1 %v1917_v36  ;;  %1874 = vmatpush3.bf16.msra.mxu0 %v1917_v36 }
 0x498   :  { %907 = vst.msk [vmem:[#allocation3 + $0x10] sm:$0xff] %vm136_vm4, %v898_v46  ;;  %1450 = vperm.xlu0 %1913, %v1412_v47   ;;  %v917_v46 = vld [vmem:[#allocation4 + $0x20] sm:$0xff] }
 0x49b   :  { %v1406_v49 = vld [vmem:[#allocation3 + $0x8] sm:$0xff]  ;;  %v1408_v52 = vld [vmem:[#allocation3 + $0x18] sm:$0xff] }
 0x49c   :  { %928 = vperm.xlu0 %1913, %v1943_v31  }
 0x49d   :  { %v949_v35 = vpop.permute.xlu0 %948 }
 0x49f   :  { %v1407_v59 = vld [vmem:[#allocation3 + $0x10] sm:$0xff] }
 0x4a0   :  { %943 = vperm.xlu0 %1913, %v1941_v5   ;;  %v966_v5 = vmul.f32 %v949_v35, %v918_v33 }
 0x4a4   :  { %933 = vperm.xlu0 %1913, %v1947_v2  }
 0x4a8   :  { %1420 = vperm.xlu0 %1913, %v1406_v49  }
 0x4ac   :  { %1435 = vperm.xlu0 %1913, %v1409_v48  }
 0x4b0   :  { %938 = vperm.xlu0 %1913, %v1945_v6   ;;  %v959_v6 = vpop.permute.xlu0 %958 }
 0x4b1   :  { %v968_v24 = vmul.f32 %v959_v6, %v920_v1 }
 0x4b4   :  { %1425 = vperm.xlu0 %1913, %v1407_v59  }
 0x4b8   :  { %873 = vadd.xlane.f32.xlu1 %v872_v51  ;;  %1430 = vperm.xlu0 %1913, %v1408_v52  }
 0x4bc   :  { %v2730_v54 = vpop.f32.mrb[20].mxu1 }
 0x4bd   :  { %v2732_v55 = vpop.f32.mrb[24].mxu0  ;;  %v1833_v12 = vpop.f32.mrb[21].mxu1 }
 0x4be   :  { %v1839_v57 = vpop.f32.mrb[25].mxu0  ;;  %v1073_v60 = vpop.f32.mrb[22].mxu1 }
 0x4bf   :  { %v1122_v3 = vpop.f32.mrb[26].mxu0  ;;  %v1834_v11 = vpop.f32.mrb[23].mxu1 }
 0x4c0   :  { %v1840_v17 = vpop.f32.mrb[27].mxu0 }
 0x4c8   :  { %v2734_v20 = vpop.f32.mrb[28].mxu0 }
 0x4c9   :  { %v1851_v22 = vpop.f32.mrb[29].mxu0 }
 0x4ca   :  { %v1220_v56 = vpop.f32.mrb[30].mxu0  ;;  %v916_v22 = vld [vmem:[#allocation4 + $0x18] sm:$0xff] }
 0x4cb   :  { %v2736_v23 = vpop.f32.mrb[24].mxu1  ;;  %v1852_v37 = vpop.f32.mrb[31].mxu0 }
 0x4cc   :  { %v1845_v16 = vpop.f32.mrb[25].mxu1 }
 0x4cd   :  { %v1171_v39 = vpop.f32.mrb[26].mxu1 }
 0x4ce   :  { %v1846_v21 = vpop.f32.mrb[27].mxu1 }
 0x4d0   :  { %v1315_v10 = vpop.f32.mrb[32].mxu0 }
 0x4d1   :  { %v1376_v8 = vadd.f32 %v1315_v10, %v967_v27  ;;  %v1863_v14 = vpop.f32.mrb[33].mxu0 }
 0x4d2   :  { %v1318_v63 = vpop.f32.mrb[34].mxu0 }
 0x4d3   :  { %1384 = vst.msk [vmem:[#allocation4 + $0x30] sm:$0xff] %vm153_vm3, %v1376_v8  ;;  %v1864_v7 = vpop.f32.mrb[35].mxu0 }
 0x4d4   :  { %v1266_v32 = vpop.f32.mrb[28].mxu1 }
 0x4d5   :  { %v1375_v13 = vadd.f32 %v1266_v32, %v966_v5  ;;  %v1857_v15 = vpop.f32.mrb[29].mxu1 }
 0x4d6   :  { %v1269_v31 = vpop.f32.mrb[30].mxu1 }
 0x4d7   :  { %1383 = vst.msk [vmem:[#allocation4 + $0x28] sm:$0xff] %vm153_vm3, %v1375_v13  ;;  %v1858_v40 = vpop.f32.mrb[31].mxu1 }
 0x4da   :  { %v1403_v49 = vld [vmem:[#allocation4 + $0x30] sm:$0xff] }
 0x4dc   :  { %v1364_v18 = vpop.f32.mrb[32].mxu1 }
 0x4dd   :  { %v1377_v19 = vadd.f32 %v1364_v18, %v968_v24  ;;  %v1869_v50 = vpop.f32.mrb[33].mxu1 }
 0x4de   :  { %v1367_v25 = vpop.f32.mrb[34].mxu1  ;;  %v1402_v53 = vld [vmem:[#allocation4 + $0x28] sm:$0xff]  ;;  %v913_v50 = vld [vmem:[#allocation4] sm:$0xff] }
 0x4df   :  { %1385 = vst.msk [vmem:[#allocation4 + $0x38] sm:$0xff] %vm153_vm3, %v1377_v19  ;;  %v1870_v28 = vpop.f32.mrb[35].mxu1 }
 0x4e6   :  { %v1404_v52 = vld [vmem:[#allocation4 + $0x38] sm:$0xff] }
 0x50f   :  { %v1441_v29 = vpop.permute.xlu1 %1440 }
 0x510   :  { %1948 = vrcp.f32 %v1441_v29 }
 0x513   :  { %v1446_v30 = vpop.permute.xlu1 %1445 }
 0x514   :  { %1950 = vrcp.f32 %v1446_v30 }
 0x517   :  { %v1451_v2 = vpop.permute.xlu0 %1450 }
 0x518   :  { %1952 = vrcp.f32 %v1451_v2 }
 0x519   :  { %1954 = vpow2.f32 %v776_v43 }
 0x51a   :  { %v1949_v41 = vpop.eup %1948 }
 0x51b   :  { %v929_v38 = vpop.permute.xlu0 %928  ;;  %v1464_v44 = vmul.f32 %v1949_v41, %v1402_v53 }
 0x51c   :  { %v962_v45 = vmul.f32 %v929_v38, %v914_v42 }
 0x51d   :  { %1587 = vrot.lane.b32.xlu0 %v1464_v44, %s2183_s18 }
 0x51e   :  { %v1951_v47 = vpop.eup %1950  ;;  %v1371_v0 = vadd.f32 %v2730_v54, %v962_v45 }
 0x51f   :  { %v944_v48 = vpop.permute.xlu0 %943  ;;  %v1466_v59 = vmul.f32 %v1951_v47, %v1403_v49  ;;  %v1470_v47 = vld [vmem:[#allocation6 + $0x8] sm:$0xff] }
 0x520   :  { %1379 = vst.msk [vmem:[#allocation4 + $0x8] sm:$0xff] %vm153_vm3, %v1371_v0  ;;  %v965_v58 = vmul.f32 %v944_v48, %v917_v46 }
 0x521   :  { %1591 = vrot.lane.b32.xlu1 %v1466_v59, %s2201_s15 }
 0x522   :  { %v1953_v62 = vpop.eup %1952  ;;  %v1374_v51 = vadd.f32 %v2734_v20, %v965_v58 }
 0x523   :  { %v934_v12 = vpop.permute.xlu0 %933  ;;  %v1468_v57 = vmul.f32 %v1953_v62, %v1404_v52  ;;  %v1955_v11 = vpop.eup %1954 }
 0x524   :  { %1382 = vst.msk [vmem:[#allocation4 + $0x20] sm:$0xff] %vm153_vm3, %v1374_v51  ;;  %v963_v60 = vmul.f32 %v934_v12, %v915_v61  ;;  %v1469_v51 = vld [vmem:[#allocation6] sm:$0xff] }
 0x525   :  { %1595 = vrot.lane.b32.xlu0 %v1468_v57, %s2202_s16 }
 0x526   :  { %v1372_v54 = vadd.f32 %v2732_v55, %v963_v60  ;;  %v856_v55 = vld [vmem:[#allocation3] sm:$0xff] }
 0x527   :  { %v1421_v3 = vpop.permute.xlu0 %1420  ;;  %v864_v21 = vmul.f32 %v1955_v11, %v856_v55 }
 0x528   :  { %1380 = vst.msk [vmem:[#allocation4 + $0x10] sm:$0xff] %vm153_vm3, %v1372_v54 }
 0x529   :  { %923 = vperm.xlu0 %1913, %v1955_v11  }
 0x52b   :  { %v1436_v17 = vpop.permute.xlu0 %1435  ;;  %v1401_v13 = vld [vmem:[#allocation4 + $0x20] sm:$0xff] }
 0x52f   :  { %v939_v56 = vpop.permute.xlu0 %938  ;;  %v1399_v16 = vld [vmem:[#allocation4 + $0x10] sm:$0xff] }
 0x530   :  { %v964_v20 = vmul.f32 %v939_v56, %v916_v22 }
 0x532   :  { %v1373_v37 = vadd.f32 %v2736_v23, %v964_v20  ;;  %v1398_v23 = vld [vmem:[#allocation4 + $0x8] sm:$0xff] }
 0x533   :  { %v1426_v26 = vpop.permute.xlu0 %1425 }
 0x534   :  { %1381 = vst.msk [vmem:[#allocation4 + $0x18] sm:$0xff] %vm153_vm3, %v1373_v37  ;;  %1956 = vrcp.f32 %v1426_v26 }
 0x535   :  { %1958 = vrcp.f32 %v1421_v3 }
 0x537   :  { %v1431_v33 = vpop.permute.xlu0 %1430 }
 0x538   :  { %1960 = vrcp.f32 %v1431_v33 }
 0x539   :  { %1962 = vrcp.f32 %v1436_v17 }
 0x53b   :  { %v1400_v5 = vld [vmem:[#allocation4 + $0x18] sm:$0xff] }
 0x53e   :  { %v1957_v9 = vpop.eup %1956 }
 0x53f   :  { %v1458_v39 = vmul.f32 %v1957_v9, %v1399_v16  ;;  %v1959_v10 = vpop.eup %1958 }
 0x540   :  { %v1456_v14 = vmul.f32 %v1959_v10, %v1398_v23 }
 0x541   :  { %1476 = vrot.lane.b32.xlu1 %v1458_v39, %s2201_s15 }
 0x542   :  { %v1961_v63 = vpop.eup %1960 }
 0x543   :  { %v1460_v7 = vmul.f32 %v1961_v63, %v1400_v5  ;;  %v1963_v32 = vpop.eup %1962 }
 0x544   :  { %v1462_v31 = vmul.f32 %v1963_v32, %v1401_v13 }
 0x545   :  { %v874_v27 = vpop.xlane.xlu1 %873 }
 0x546   :  { %v896_v35 = vadd.f32 %v874_v27, %v864_v21 }
 0x548   :  { %905 = vst.msk [vmem:[#allocation3] sm:$0xff] %vm136_vm4, %v896_v35  ;;  %v1712_v35 = vld [vmem:[#allocation17] ss:$0 sm:$0xff] }
 0x54f   :  { %v1405_v8 = vld [vmem:[#allocation3] sm:$0xff] }
 0x550   :  { %1415 = vperm.xlu0 %1913, %v1405_v8   ;;  %v1713_v8 = vld [vmem:[#allocation18] ss:$0 sm:$0xff] }
 0x554   :  { %1472 = vrot.lane.b32.xlu0 %v1456_v14, %s2183_s18  ;;  %s2203_s18 = smov 32  }
 0x558   :  { %1480 = vrot.lane.b32.xlu0 %v1460_v7, %s2202_s16 }
 0x58f   :  { %v1588_v15 = vpop.permute.xlu0 %1587 }
 0x590   :  { %v1598_v1 = vsel %vm153_vm3, %v1462_v31, %v1588_v15 }
 0x593   :  { %v1592_v40 = vpop.permute.xlu1 %1591 }
 0x594   :  { %v1599_v6 = vsel %vm1484_vm6, %v1598_v1, %v1592_v40 }
 0x597   :  { %v1596_v24 = vpop.permute.xlu0 %1595 }
 0x598   :  { %v1600_v18 = vsel %vm1486_vm7, %v1599_v6, %v1596_v24 }
 0x599   :  { %v1601_v19 = vpack.c.bf16 %v1600_v18, %v1600_v18 }
 0x59b   :  { %1884 = vmatmul.mubr.msk.bf16.vlgmr.msra.gmra.mrb[36].mxu1 %vm227_vm2, %v1601_v19 }
 0x5a8   :  { %v924_v25 = vpop.permute.xlu0 %923 }
 0x5a9   :  { %v961_v28 = vmul.f32 %v924_v25, %v913_v50 }
 0x5ab   :  { %v1370_v29 = vadd.f32 %v2707_v4, %v961_v28  ;;  %v1708_v4 = vld [vmem:[#allocation15] ss:$0 sm:$0xff] }
 0x5ad   :  { %1378 = vst.msk [vmem:[#allocation4] sm:$0xff] %vm153_vm3, %v1370_v29 }
 0x5b3   :  { %v1477_v41 = vpop.permute.xlu1 %1476 }
 0x5b4   :  { %v1397_v36 = vld [vmem:[#allocation4] sm:$0xff] }
 0x5cf   :  { %v1416_v30 = vpop.permute.xlu0 %1415 }
 0x5d0   :  { %1964 = vrcp.f32 %v1416_v30 }
 0x5d3   :  { %v1473_v34 = vpop.permute.xlu0 %1472 }
 0x5d7   :  { %v1481_v38 = vpop.permute.xlu0 %1480 }
 0x5da   :  { %v1965_v2 = vpop.eup %1964 }
 0x5db   :  { %v1454_v42 = vmul.f32 %v1965_v2, %v1397_v36 }
 0x5dd   :  { %v1483_v43 = vsel %vm153_vm3, %v1454_v42, %v1473_v34 }
 0x5de   :  { %v1485_v53 = vsel %vm1484_vm6, %v1483_v43, %v1477_v41 }
 0x5df   :  { %v1487_v44 = vsel %vm1486_vm7, %v1485_v53, %v1481_v38 }
 0x5e0   :  { %v1488_v45 = vpack.c.bf16 %v1487_v44, %v1487_v44 }
 0x5e2   :  { %1876 = vmatmul.mubr.msk.bf16.vlgmr.msra.gmra.mrb[36].mxu0 %vm227_vm2, %v1488_v45 }
 0x66e   :  { %v1639_v46 = vpop.f32.mrb[36].mxu1 }
 0x66f   :  { %v1640_v0 = vadd.f32 %v1708_v4, %v1639_v46  ;;  %v1885_v49 = vpop.f32.mrb[37].mxu1 }
 0x670   :  { %v1642_v48 = vpop.f32.mrb[38].mxu1 }
 0x671   :  { %v1886_v59 = vpop.f32.mrb[39].mxu1  ;;  %v1645_v58 = vadd.f32 %v1640_v0, %v1470_v47 }
 0x673   :  { %v1646_v61 = vsel %vm227_vm2, %v1645_v58, 0.0 }
 0x674   :  { %1647 = vadd.xlane.f32.xlu1 %v1646_v61 }
 0x6b5   :  { %v1549_v62 = vpop.f32.mrb[36].mxu0 }
 0x6b6   :  { %v1550_v52 = vadd.f32 %v1708_v4, %v1549_v62  ;;  %v1877_v12 = vpop.f32.mrb[37].mxu0 }
 0x6b7   :  { %v1552_v57 = vpop.f32.mrb[38].mxu0 }
 0x6b8   :  { %v1878_v60 = vpop.f32.mrb[39].mxu0  ;;  %v1555_v54 = vadd.f32 %v1550_v52, %v1469_v51 }
 0x6ba   :  { %v1556_v3 = vsel %vm227_vm2, %v1555_v54, 0.0 }
 0x6bb   :  { %1557 = vadd.xlane.f32.xlu0 %v1556_v3 }
 0x701   :  { %v1648_v11 = vpop.xlane.xlu1 %1647 }
 0x702   :  { %v1649_v17 = vmul.f32 0.03125, %v1648_v11 }
 0x704   :  { %v1650_v22 = vsub.f32 %v1645_v58, %v1649_v17 }
 0x706   :  { %v1651_v56 = vmul.f32 %v1650_v22, %v1650_v22 }
 0x708   :  { %v1652_v20 = vsel %vm227_vm2, %v1651_v56, 0.0 }
 0x709   :  { %1653 = vadd.xlane.f32.xlu0 %v1652_v20 }
 0x748   :  { %v1558_v37 = vpop.xlane.xlu0 %1557 }
 0x749   :  { %v1560_v26 = vmul.f32 0.03125, %v1558_v37 }
 0x74b   :  { %v1561_v9 = vsub.f32 %v1555_v54, %v1560_v26 }
 0x74d   :  { %v1562_v16 = vmul.f32 %v1561_v9, %v1561_v9 }
 0x74f   :  { %v1563_v39 = vsel %vm227_vm2, %v1562_v16, 0.0 }
 0x750   :  { %1564 = vadd.xlane.f32.xlu0 %v1563_v39 }
 0x796   :  { %v1654_v55 = vpop.xlane.xlu0 %1653 }
 0x797   :  { %v1655_v21 = vmul.f32 0.03125, %v1654_v55 }
 0x799   :  { %v1656_v27 = vadd.f32 1e-05, %v1655_v21 }
 0x79b   :  { %1966 = vrsqrt.f32 %v1656_v27 }
 0x7a5   :  { %v1967_v33 = vpop.eup %1966 }
 0x7a6   :  { %v1658_v10 = vmul.f32 %v1967_v33, %v1650_v22 }
 0x7a8   :  { %v1659_v23 = vmul.f32 %v1712_v35, %v1658_v10 }
 0x7aa   :  { %v1660_v14 = vadd.f32 %v1713_v8, %v1659_v23 }
 0x7ac   :  { %1662 = vrot.lane.b32.xlu1 %v1660_v14, %s2203_s18 }
 0x7dd   :  { %v1565_v63 = vpop.xlane.xlu0 %1564 }
 0x7de   :  { %v1566_v5 = vmul.f32 0.03125, %v1565_v63 }
 0x7e0   :  { %v1567_v7 = vadd.f32 1e-05, %v1566_v5 }
 0x7e2   :  { %1968 = vrsqrt.f32 %v1567_v7 }
 0x7ec   :  { %v1969_v32 = vpop.eup %1968 }
 0x7ed   :  { %v1569_v13 = vmul.f32 %v1969_v32, %v1561_v9 }
 0x7ef   :  { %v1577_v15 = vmul.f32 %v1712_v35, %v1569_v13 }
 0x7f1   :  { %v1585_v31 = vadd.f32 %v1713_v8, %v1577_v15 }
 0x81e   :  { %v1663_v40 = vpop.permute.xlu1 %1662 }
 0x81f   :  { %v1665_v1 = vsel %vm227_vm2, %v1585_v31, %v1663_v40 }
 0x820   :  { %1667 = vst.msk [vmem:[#allocation20] sm:$0xff] %vm1666_vm8, %v1665_v1 }
 0x821   :  { %2157 = shalt.err (!%p2154_p12)
}
 0x822   :  { %s2158_s30 = scalar_lea.hbm %s2794_s8, 128 }
 0x823   :  { %p2159_p13 = scmp.ne.s32.totalorder %s2794_s8, %s2158_s30  ;;  %p2162_p0 = scmp.lt.u32.totalorder %s2158_s30, %s2794_s8 }
 0x825   :  { %p2164_p1 = pnand %p2162_p0, %p2159_p13 }
 0x827   :  { %2167 = shalt.err (!%p2164_p1)
}
 0x828   :  { %1677 = dma.vmem_to_hbm [thread:$0]  %s1675_s20, 128, %s2794_s8, [#allocation8]  }
 0x829   :  { %2178 = dma.done.wait [#allocation8], 128  }
 0x82a   :  { %2179 = vsyncadd [#allocation8], 4294967168 }
 0x82b   :  { %1681 = vsyncpa [#allocation7], 1 }
 0x82c   :  { %1682 = vsyncpa [#allocation10], 1 }
 0x82d   :  { %1683 = vsyncpa [#allocation13], 1 }
 0x82e   :  { %1684 = vsyncpa [#allocation16], 1 }
 0x82f   :  { %1685 = vsyncpa [#allocation19], 1 }
 0x830   :  { %1686 = vsyncpa [#allocation8], 1 }

</bundles_post_ra>
